<compile_context>
chip_gen: v5e
topology: v5e:2x2
jax: 0.10.0
libtpu: 0.0.40
codegen_flags: <defaults>
</compile_context>

<pallas_src>
import math
from functools import partial

import jax
import jax.numpy as jnp
from jax.experimental import pallas as pl
from jax.experimental.pallas import tpu as pltpu


def _layernorm(z, g, b, eps=1e-5):
    mu = jnp.mean(z, axis=-1, keepdims=True)
    var = jnp.mean((z - mu) ** 2, axis=-1, keepdims=True)
    return (z - mu) * jax.lax.rsqrt(var + eps) * g + b


# ----------------------------- Pallas kernel ------------------------------- #
def predictor_kernel(x_ref, wqkv_ref, wproj_ref, cos_ref, sin_ref, bias_ref,
                     ln1g_ref, ln1b_ref, w1_ref, b1_ref, w2_ref, b2_ref,
                     wlast_ref, blast_ref, ln2g_ref, ln2b_ref,
                     o_ref, attn_ref,
                     *, num_heads, num_predicts, seq_len, approx_recip):
    md = wqkv_ref.dtype                       # MXU input dtype (bf16 or f32)
    x = x_ref[...].astype(jnp.float32)        # (R, H), R = bb * S rows
    R, H = x.shape
    S = seq_len
    bb = R // S
    hd = H // num_heads

    # qkv projection (+ pre-swapped q/k columns for rotary): one wide MXU matmul.
    # 1/sqrt(hd) is already folded into the q / q_swap weight columns.
    qkv = jnp.dot(x.astype(md), wqkv_ref[...],
                  preferred_element_type=jnp.float32)              # (R, 5H)
    q, k, v = qkv[:, :H], qkv[:, H:2 * H], qkv[:, 2 * H:3 * H]
    q_sw, k_sw = qkv[:, 3 * H:4 * H], qkv[:, 4 * H:5 * H]

    # rotary embedding: pair-swap (and sign) folded into the weight, so this is purely
    # element-wise (VPU).  cos/sin come in as (S, H) and broadcast over the bb batch rows.
    # reshape (R,H)->(bb,S,H) only splits the sublane dim (free when S % 8 == 0).
    cos = cos_ref[...][None]                                       # (1, S, H)
    sin = sin_ref[...][None]
    q3 = q.reshape(bb, S, H) * cos + q_sw.reshape(bb, S, H) * sin
    k3 = k.reshape(bb, S, H) * cos + k_sw.reshape(bb, S, H) * sin
    v3 = v.reshape(bb, S, H)

    # (S, S) additive causal bias (0 / -1e30), grid-invariant constant input.
    # NOTE: scores are held in f32 (preferred_element_type), so -1e30 stays finite; do not
    # hold the scores in bf16.
    bias = bias_ref[...][None]                                     # (1, S, S)

    # per-head attention, batched over the bb batch elements (no bb^2 waste, no R x R
    # intermediates).  'bqd,bkd->bqk' contracts the last dims directly on the MXU -- no
    # explicit transpose of k.  Heads are statically unrolled (num_heads is small); each
    # head's output lands in the VMEM scratch at its lane offset.
    for h in range(num_heads):
        sl = slice(h * hd, (h + 1) * hd)
        qh = q3[:, :, sl].astype(md)
        kh = k3[:, :, sl].astype(md)
        vh = v3[:, :, sl].astype(md)
        s = jnp.einsum('bqd,bkd->bqk', qh, kh,
                       preferred_element_type=jnp.float32) + bias  # (bb, S, S)
        s = s - jnp.max(s, axis=-1, keepdims=True)
        p = jnp.exp(s)
        p = p * pl.reciprocal(jnp.sum(p, axis=-1, keepdims=True),
                              approx=approx_recip)
        oh = jnp.einsum('bqk,bkd->bqd', p.astype(md), vh,
                        preferred_element_type=jnp.float32)        # (bb, S, hd)
        attn_ref[:, sl] = oh.reshape(R, hd)

    # fused output projection: one (R,H)@(H,H) matmul on the scratch-assembled heads.
    attn = jnp.dot(attn_ref[...].astype(md), wproj_ref[...],
                   preferred_element_type=jnp.float32)

    # residual + layernorm (f32 VPU math).
    y = _layernorm(x + attn, ln1g_ref[...], ln1b_ref[...])         # (R, H)

    # fully connected: Linear -> ReLU -> Linear(FC -> P*H); Dropout is identity at inference.
    h1 = jnp.maximum(
        jnp.dot(y.astype(md), w1_ref[...],
                preferred_element_type=jnp.float32) + b1_ref[...], 0.0)
    xp = jnp.dot(h1.astype(md), w2_ref[...],
                 preferred_element_type=jnp.float32) + b2_ref[...]  # (R, P*H)

    # prediction heads: no row/lane concatenates -- per head residual + last_linear
    # (M = R matmul), layernorm, and a direct store into the output lanes.
    for pidx in range(num_predicts):
        sl = slice(pidx * H, (pidx + 1) * H)
        z = jnp.dot((xp[:, sl] + y).astype(md), wlast_ref[...],
                    preferred_element_type=jnp.float32) + blast_ref[...]
        z = _layernorm(z, ln2g_ref[...], ln2b_ref[...])
        o_ref[:, sl] = z.astype(o_ref.dtype)


# ------------------------------- Wrapper ------------------------------------ #
def _pick_batch_block(batch, seq_len, max_rows=512, min_grid=2):
    """Largest divisor bb of batch with bb*seq_len <= max_rows.

    Keeps the grid (batch // bb) >= min_grid so both v7x TensorCores are fed via
    dimension_semantics=("parallel",) (irrelevant on single-TC v5e/v6e), and keeps the
    row block sublane-aligned.  On v7x, cap max_rows (~256-384) against its 64 MiB VMEM.
    """
    bb = 1
    for d in range(1, batch + 1):
        rows = d * seq_len
        if (batch % d == 0 and rows <= max_rows
                and batch // d >= min(min_grid, batch)
                and (rows % 8 == 0 or batch // d == 1)):
            bb = d
    if (bb * seq_len) % 8 != 0 and batch // bb != 1:
        bb = batch   # grid=1: block equals the full array, so the (8,128) rule is waived
    return bb


def _expand_qkv_weight(wqkv, hidden, head_dim):
    """[Wq | Wk | Wv] -> [Wq*s | Wk | Wv | swap(Wq)*s | swap(Wk)], s = 1/sqrt(head_dim).

    The *_swap blocks have their output columns pair-swapped and sign-flipped so that
    x @ swap(W) equals the llama "rotate pairs" of x @ W, folding the rotary lane shuffle
    into the single qkv matmul.  The attention scale is folded into the q columns (rotation
    is linear, so scaling commutes with RoPE).  Done once at parameter-prep time.
    """
    def swap(w):
        w3 = w.reshape(w.shape[0], hidden // 2, 2)
        return jnp.stack([-w3[..., 1], w3[..., 0]],
                         axis=-1).reshape(w.shape[0], hidden)

    scale = 1.0 / math.sqrt(head_dim)
    wq, wk, wv = wqkv[:, :hidden], wqkv[:, hidden:2 * hidden], wqkv[:, 2 * hidden:]
    return jnp.concatenate([wq * scale, wk, wv, swap(wq) * scale, swap(wk)], axis=-1)


@partial(jax.jit, static_argnames=("num_heads", "num_predicts", "mxu_dtype",
                                   "batch_block", "approx_recip"))
def predictor_forward(x, params, *, num_heads, num_predicts,
                      mxu_dtype=jnp.bfloat16, batch_block=None, approx_recip=False):
    B, S, H = x.shape
    assert H % num_heads == 0 and (H // num_heads) % 2 == 0
    PH = num_predicts * H
    bb = batch_block if batch_block is not None else _pick_batch_block(B, S)
    assert B % bb == 0, (B, bb)
    R = bb * S
    hd = H // num_heads

    # parameter prep (constant-folded under jit): bf16 weights for the MXU, rotary swap
    # + attention scale folded into qkv columns, (S,S) additive causal bias.
    wqkv = _expand_qkv_weight(params['wqkv'], H, hd).astype(mxu_dtype)   # (H, 5H)
    wproj = params['wproj'].astype(mxu_dtype)
    w1 = params['w1'].astype(mxu_dtype)
    w2 = params['w2'].astype(mxu_dtype)
    wlast = params['wlast'].astype(mxu_dtype)
    cos = params['rope_cos'].astype(jnp.float32)                         # (S, H)
    sin = params['rope_sin'].astype(jnp.float32)                         # (S, H)
    causal = jnp.tril(jnp.ones((S, S), dtype=bool))
    bias = jnp.where(causal, 0.0, -1e30).astype(jnp.float32)             # (S, S)

    x2 = x.reshape(B * S, H)                 # free, contiguous reshape

    kernel = partial(predictor_kernel, num_heads=num_heads,
                     num_predicts=num_predicts, seq_len=S,
                     approx_recip=approx_recip)

    def const_spec(a):
        # grid-invariant constants (weights / rope / bias / LN params).
        # TODO(synk): on v7x add pipeline_mode=pl.Buffered(1) here to halve the constant
        # VMEM footprint once H / FC are large enough for it to matter.
        nd = a.ndim
        return pl.BlockSpec(a.shape, lambda i, _nd=nd: (0,) * _nd)

    consts = (wqkv, wproj, cos, sin, bias,
              params['ln1g'], params['ln1b'],
              w1, params['b1'], w2, params['b2'],
              wlast, params['blast'], params['ln2g'], params['ln2b'])

    out = pl.pallas_call(
        kernel,
        out_shape=jax.ShapeDtypeStruct((B * S, PH), jnp.float32),
        grid=(B // bb,),
        in_specs=[pl.BlockSpec((R, H), lambda i: (i, 0))]
                 + [const_spec(a) for a in consts],
        out_specs=pl.BlockSpec((R, PH), lambda i: (i, 0)),
        scratch_shapes=[pltpu.VMEM((R, H), jnp.float32)],   # per-head attention assembly
        compiler_params=pltpu.CompilerParams(
            dimension_semantics=("parallel",),
            vmem_limit_bytes=32 * 1024 * 1024),
    )(x2, *consts)

    # Output already has (b, s, p, h)-major ordering: reshape is free.
    return out.reshape(B, S, num_predicts, H)


# ------------------------- Parameter construction --------------------------- #
def init_params(key, H, FC, P, S, num_heads):
    hd = H // num_heads
    ks = jax.random.split(key, 12)

    def lin(k, din, dout):
        return jax.random.normal(k, (din, dout), jnp.float32) / math.sqrt(din)

    params = dict(
        wqkv=lin(ks[0], H, 3 * H),
        wproj=lin(ks[1], H, H),
        w1=lin(ks[2], H, FC),
        b1=jax.random.normal(ks[3], (1, FC)) * 0.02,
        w2=lin(ks[4], FC, P * H),
        b2=jax.random.normal(ks[5], (1, P * H)) * 0.02,
        wlast=lin(ks[6], H, H),
        blast=jax.random.normal(ks[7], (1, H)) * 0.02,
        ln1g=1.0 + jax.random.normal(ks[8], (1, H)) * 0.02,
        ln1b=jax.random.normal(ks[9], (1, H)) * 0.02,
        ln2g=1.0 + jax.random.normal(ks[10], (1, H)) * 0.02,
        ln2b=jax.random.normal(ks[11], (1, H)) * 0.02,
    )

    # rotary tables: precompute_freqs_cis(seq_len, head_dim), theta=10000,
    # interleaved (llama) pairs.
    freqs = 1.0 / (10000.0 ** (jnp.arange(0, hd, 2, dtype=jnp.float32) / hd))
    angles = jnp.outer(jnp.arange(S, dtype=jnp.float32), freqs)    # (S, hd/2)
    cos2, sin2 = jnp.cos(angles), jnp.sin(angles)
    params['cos2'], params['sin2'] = cos2, sin2                    # for the reference
    params['rope_cos'] = jnp.tile(jnp.repeat(cos2, 2, axis=-1), (1, num_heads))  # (S, H)
    params['rope_sin'] = jnp.tile(jnp.repeat(sin2, 2, axis=-1), (1, num_heads))  # (S, H)
    return params


# ------------------------- Pure-JAX reference (check) ------------------------ #
def reference_forward(x, params, *, num_heads, num_predicts):
    B, S, H = x.shape
    hd = H // num_heads
    qkv = x @ params['wqkv']
    q, k, v = qkv[..., :H], qkv[..., H:2 * H], qkv[..., 2 * H:]
    q, k, v = (t.reshape(B, S, num_heads, hd) for t in (q, k, v))

    def rot(t):
        tr = t.reshape(B, S, num_heads, hd // 2, 2)
        te, to = tr[..., 0], tr[..., 1]
        c = params['cos2'][None, :, None, :]
        s = params['sin2'][None, :, None, :]
        return jnp.stack([te * c - to * s, te * s + to * c],
                         axis=-1).reshape(B, S, num_heads, hd)

    q, k = rot(q), rot(k)
    q, k, v = (t.transpose(0, 2, 1, 3) for t in (q, k, v))   # (B, nh, S, hd)
    scores = jnp.einsum('bhqd,bhkd->bhqk', q, k) / math.sqrt(hd)
    mask = jnp.tril(jnp.ones((S, S), bool))
    scores = jnp.where(mask[None, None], scores, -1e30)
    scores = scores - scores.max(-1, keepdims=True)
    p = jnp.exp(scores)
    p = p / p.sum(-1, keepdims=True)
    attn = jnp.einsum('bhqk,bhkd->bhqd', p, v).transpose(0, 2, 1, 3).reshape(B, S, H)
    attn = attn @ params['wproj']

    y = _layernorm(x + attn, params['ln1g'], params['ln1b'])
    h1 = jnp.maximum(y @ params['w1'] + params['b1'], 0.0)       # dropout = identity
    h2 = (h1 @ params['w2'] + params['b2']).reshape(B, S, num_predicts, H)
    z = (h2 + y[:, :, None, :]) @ params['wlast'] + params['blast']
    return _layernorm(z, params['ln2g'], params['ln2b'])


if __name__ == "__main__":
    B, S, H = 2, 8, 32
    num_heads, num_predicts, FC = 4, 3, 64

    key = jax.random.PRNGKey(0)
    kx, kp = jax.random.split(key)
    x = jax.random.normal(kx, (B, S, H), jnp.float32)
    params = init_params(kp, H, FC, num_predicts, S, num_heads)

    ref = jax.block_until_ready(reference_forward(
        x, params, num_heads=num_heads, num_predicts=num_predicts))

    # f32-operand path: structural check.  Tolerance accounts for TPU default matmul
    # precision (bf16 multiplicands) used by both the kernel and the jnp reference.
    out_f32 = jax.block_until_ready(predictor_forward(
        x, params, num_heads=num_heads, num_predicts=num_predicts,
        mxu_dtype=jnp.float32))
    assert out_f32.shape == (B, S, num_predicts, H), out_f32.shape
    if not bool(jnp.allclose(out_f32, ref, atol=5e-2, rtol=5e-2)):
        raise AssertionError("f32 Pallas kernel does not match reference")

    # performance path (bf16 MXU inputs, f32 accumulation): tolerance relaxed only for
    # bf16 rounding of the matmul operands.
    out_bf16 = jax.block_until_ready(predictor_forward(
        x, params, num_heads=num_heads, num_predicts=num_predicts,
        mxu_dtype=jnp.bfloat16))
    assert out_bf16.shape == (B, S, num_predicts, H), out_bf16.shape
    if not bool(jnp.allclose(out_bf16, ref, atol=1e-1, rtol=1e-1)):
        raise AssertionError("bf16 Pallas kernel deviates too much from reference")

    print("KERNEL_OK")
</pallas_src>

<mosaic_0001>
module attributes {stable_mosaic.version = 11 : i64} {
  func.func @predictor_kernel(%arg0: i32, %arg1: memref<8x32xf32, #tpu.memory_space<vmem>>, %arg2: memref<32x160xf32, #tpu.memory_space<vmem>>, %arg3: memref<32x32xf32, #tpu.memory_space<vmem>>, %arg4: memref<8x32xf32, #tpu.memory_space<vmem>>, %arg5: memref<8x32xf32, #tpu.memory_space<vmem>>, %arg6: memref<8x8xf32, #tpu.memory_space<vmem>>, %arg7: memref<1x32xf32, #tpu.memory_space<vmem>>, %arg8: memref<1x32xf32, #tpu.memory_space<vmem>>, %arg9: memref<32x64xf32, #tpu.memory_space<vmem>>, %arg10: memref<1x64xf32, #tpu.memory_space<vmem>>, %arg11: memref<64x96xf32, #tpu.memory_space<vmem>>, %arg12: memref<1x96xf32, #tpu.memory_space<vmem>>, %arg13: memref<32x32xf32, #tpu.memory_space<vmem>>, %arg14: memref<1x32xf32, #tpu.memory_space<vmem>>, %arg15: memref<1x32xf32, #tpu.memory_space<vmem>>, %arg16: memref<1x32xf32, #tpu.memory_space<vmem>>, %arg17: memref<8x96xf32, #tpu.memory_space<vmem>>, %arg18: memref<8x32xf32, #tpu.memory_space<vmem>>) attributes {dimension_semantics = [#tpu.dimension_semantics<parallel>], iteration_bounds = array<i64: 2>, scalar_prefetch = 0 : i64, scratch_operands = 1 : i64, tpu.core_type = #tpu.core_type<tc>, window_params = [{transform_indices = @transform_0, window_bounds = array<i64: 8, 32>}, {pipeline_mode = #tpu.pipeline_mode<synchronous>, transform_indices = @transform_1, window_bounds = array<i64: 32, 160>}, {pipeline_mode = #tpu.pipeline_mode<synchronous>, transform_indices = @transform_2, window_bounds = array<i64: 32, 32>}, {pipeline_mode = #tpu.pipeline_mode<synchronous>, transform_indices = @transform_3, window_bounds = array<i64: 8, 32>}, {pipeline_mode = #tpu.pipeline_mode<synchronous>, transform_indices = @transform_4, window_bounds = array<i64: 8, 32>}, {pipeline_mode = #tpu.pipeline_mode<synchronous>, transform_indices = @transform_5, window_bounds = array<i64: 8, 8>}, {pipeline_mode = #tpu.pipeline_mode<synchronous>, transform_indices = @transform_6, window_bounds = array<i64: 1, 32>}, {pipeline_mode = #tpu.pipeline_mode<synchronous>, transform_indices = @transform_7, window_bounds = array<i64: 1, 32>}, {pipeline_mode = #tpu.pipeline_mode<synchronous>, transform_indices = @transform_8, window_bounds = array<i64: 32, 64>}, {pipeline_mode = #tpu.pipeline_mode<synchronous>, transform_indices = @transform_9, window_bounds = array<i64: 1, 64>}, {pipeline_mode = #tpu.pipeline_mode<synchronous>, transform_indices = @transform_10, window_bounds = array<i64: 64, 96>}, {pipeline_mode = #tpu.pipeline_mode<synchronous>, transform_indices = @transform_11, window_bounds = array<i64: 1, 96>}, {pipeline_mode = #tpu.pipeline_mode<synchronous>, transform_indices = @transform_12, window_bounds = array<i64: 32, 32>}, {pipeline_mode = #tpu.pipeline_mode<synchronous>, transform_indices = @transform_13, window_bounds = array<i64: 1, 32>}, {pipeline_mode = #tpu.pipeline_mode<synchronous>, transform_indices = @transform_14, window_bounds = array<i64: 1, 32>}, {pipeline_mode = #tpu.pipeline_mode<synchronous>, transform_indices = @transform_15, window_bounds = array<i64: 1, 32>}, {transform_indices = @transform_16, window_bounds = array<i64: 8, 96>}]} {
    %c0 = arith.constant 0 : index
    %c0_0 = arith.constant 0 : index
    %0 = vector.load %arg1[%c0, %c0_0] : memref<8x32xf32, #tpu.memory_space<vmem>>, vector<8x32xf32>
    %c0_1 = arith.constant 0 : index
    %c0_2 = arith.constant 0 : index
    %1 = vector.load %arg2[%c0_1, %c0_2] : memref<32x160xf32, #tpu.memory_space<vmem>>, vector<32x160xf32>
    %cst = arith.constant dense<0.000000e+00> : vector<8x160xf32>
    %2 = tpu.matmul %0, %1, %cst {dimension_numbers = #tpu.dot_dimension_numbers<[1], [0], [0], [1], [0, 0, 1, 1], [], []>} : vector<8x32xf32>, vector<32x160xf32>, vector<8x160xf32> -> vector<8x160xf32>
    %3 = vector.extract_strided_slice %2 {offsets = [0, 0], sizes = [8, 32], strides = [1, 1]} : vector<8x160xf32> to vector<8x32xf32>
    %4 = vector.extract_strided_slice %2 {offsets = [0, 32], sizes = [8, 32], strides = [1, 1]} : vector<8x160xf32> to vector<8x32xf32>
    %5 = vector.extract_strided_slice %2 {offsets = [0, 64], sizes = [8, 32], strides = [1, 1]} : vector<8x160xf32> to vector<8x32xf32>
    %6 = vector.extract_strided_slice %2 {offsets = [0, 96], sizes = [8, 32], strides = [1, 1]} : vector<8x160xf32> to vector<8x32xf32>
    %7 = vector.extract_strided_slice %2 {offsets = [0, 128], sizes = [8, 32], strides = [1, 1]} : vector<8x160xf32> to vector<8x32xf32>
    %c0_3 = arith.constant 0 : index
    %c0_4 = arith.constant 0 : index
    %8 = vector.load %arg4[%c0_3, %c0_4] : memref<8x32xf32, #tpu.memory_space<vmem>>, vector<8x32xf32>
    %9 = vector.shape_cast %8 : vector<8x32xf32> to vector<1x8x32xf32>
    %c0_5 = arith.constant 0 : index
    %c0_6 = arith.constant 0 : index
    %10 = vector.load %arg5[%c0_5, %c0_6] : memref<8x32xf32, #tpu.memory_space<vmem>>, vector<8x32xf32>
    %11 = vector.shape_cast %10 : vector<8x32xf32> to vector<1x8x32xf32>
    %12 = vector.shape_cast %3 : vector<8x32xf32> to vector<1x8x32xf32>
    %13 = arith.mulf %12, %9 : vector<1x8x32xf32>
    %14 = vector.shape_cast %6 : vector<8x32xf32> to vector<1x8x32xf32>
    %15 = arith.mulf %14, %11 : vector<1x8x32xf32>
    %16 = arith.addf %13, %15 : vector<1x8x32xf32>
    %17 = vector.shape_cast %4 : vector<8x32xf32> to vector<1x8x32xf32>
    %18 = arith.mulf %17, %9 : vector<1x8x32xf32>
    %19 = vector.shape_cast %7 : vector<8x32xf32> to vector<1x8x32xf32>
    %20 = arith.mulf %19, %11 : vector<1x8x32xf32>
    %21 = arith.addf %18, %20 : vector<1x8x32xf32>
    %22 = vector.shape_cast %5 : vector<8x32xf32> to vector<1x8x32xf32>
    %c0_7 = arith.constant 0 : index
    %c0_8 = arith.constant 0 : index
    %23 = vector.load %arg6[%c0_7, %c0_8] : memref<8x8xf32, #tpu.memory_space<vmem>>, vector<8x8xf32>
    %24 = vector.shape_cast %23 : vector<8x8xf32> to vector<1x8x8xf32>
    %25 = vector.extract_strided_slice %16 {offsets = [0, 0, 0], sizes = [1, 8, 8], strides = [1, 1, 1]} : vector<1x8x32xf32> to vector<1x8x8xf32>
    %26 = vector.extract_strided_slice %21 {offsets = [0, 0, 0], sizes = [1, 8, 8], strides = [1, 1, 1]} : vector<1x8x32xf32> to vector<1x8x8xf32>
    %27 = vector.extract_strided_slice %22 {offsets = [0, 0, 0], sizes = [1, 8, 8], strides = [1, 1, 1]} : vector<1x8x32xf32> to vector<1x8x8xf32>
    "tpu.trace_start"() <{level = 10 : i32, message = "bqd,bkd->bqk"}> : () -> ()
    %cst_9 = arith.constant dense<0.000000e+00> : vector<1x8x8xf32>
    %28 = tpu.matmul %25, %26, %cst_9 {dimension_numbers = #tpu.dot_dimension_numbers<[2], [2], [1], [1], [0, 0, 0, 1, 1, 1], [0], [0]>} : vector<1x8x8xf32>, vector<1x8x8xf32>, vector<1x8x8xf32> -> vector<1x8x8xf32>
    "tpu.trace_stop"() : () -> ()
    %29 = arith.addf %28, %24 : vector<1x8x8xf32>
    %cst_10 = arith.constant dense<0xFF800000> : vector<1x8xf32>
    %30 = vector.multi_reduction <maximumf>, %29, %cst_10 [2] : vector<1x8x8xf32> to vector<1x8xf32>
    %31 = vector.shape_cast %30 : vector<1x8xf32> to vector<1x8x1xf32>
    %32 = vector.broadcast %31 : vector<1x8x1xf32> to vector<1x8x8xf32>
    %33 = arith.subf %29, %32 : vector<1x8x8xf32>
    %34 = math.exp %33 : vector<1x8x8xf32>
    %cst_11 = arith.constant dense<0.000000e+00> : vector<1x8xf32>
    %35 = vector.multi_reduction <add>, %34, %cst_11 [2] : vector<1x8x8xf32> to vector<1x8xf32>
    %36 = vector.shape_cast %35 : vector<1x8xf32> to vector<1x8x1xf32>
    %37 = tpu.reciprocal %36 : vector<1x8x1xf32> -> vector<1x8x1xf32>
    %38 = vector.broadcast %37 : vector<1x8x1xf32> to vector<1x8x8xf32>
    %39 = arith.mulf %34, %38 : vector<1x8x8xf32>
    "tpu.trace_start"() <{level = 10 : i32, message = "bqk,bkd->bqd"}> : () -> ()
    %cst_12 = arith.constant dense<0.000000e+00> : vector<1x8x8xf32>
    %40 = tpu.matmul %39, %27, %cst_12 {dimension_numbers = #tpu.dot_dimension_numbers<[2], [1], [1], [2], [0, 0, 0, 1, 1, 2], [0], [0]>} : vector<1x8x8xf32>, vector<1x8x8xf32>, vector<1x8x8xf32> -> vector<1x8x8xf32>
    "tpu.trace_stop"() : () -> ()
    %41 = vector.shape_cast %40 : vector<1x8x8xf32> to vector<8x8xf32>
    %c0_13 = arith.constant 0 : index
    %c0_14 = arith.constant 0 : index
    %42 = vector.load %arg18[%c0_13, %c0_14] : memref<8x32xf32, #tpu.memory_space<vmem>>, vector<8x8xf32>
    tpu.vector_store %arg18[%c0_13, %c0_14], %41 {strides = array<i32>} : memref<8x32xf32, #tpu.memory_space<vmem>>, vector<8x8xf32>,
    %43 = vector.extract_strided_slice %16 {offsets = [0, 0, 8], sizes = [1, 8, 8], strides = [1, 1, 1]} : vector<1x8x32xf32> to vector<1x8x8xf32>
    %44 = vector.extract_strided_slice %21 {offsets = [0, 0, 8], sizes = [1, 8, 8], strides = [1, 1, 1]} : vector<1x8x32xf32> to vector<1x8x8xf32>
    %45 = vector.extract_strided_slice %22 {offsets = [0, 0, 8], sizes = [1, 8, 8], strides = [1, 1, 1]} : vector<1x8x32xf32> to vector<1x8x8xf32>
    "tpu.trace_start"() <{level = 10 : i32, message = "bqd,bkd->bqk"}> : () -> ()
    %cst_15 = arith.constant dense<0.000000e+00> : vector<1x8x8xf32>
    %46 = tpu.matmul %43, %44, %cst_15 {dimension_numbers = #tpu.dot_dimension_numbers<[2], [2], [1], [1], [0, 0, 0, 1, 1, 1], [0], [0]>} : vector<1x8x8xf32>, vector<1x8x8xf32>, vector<1x8x8xf32> -> vector<1x8x8xf32>
    "tpu.trace_stop"() : () -> ()
    %47 = arith.addf %46, %24 : vector<1x8x8xf32>
    %cst_16 = arith.constant dense<0xFF800000> : vector<1x8xf32>
    %48 = vector.multi_reduction <maximumf>, %47, %cst_16 [2] : vector<1x8x8xf32> to vector<1x8xf32>
    %49 = vector.shape_cast %48 : vector<1x8xf32> to vector<1x8x1xf32>
    %50 = vector.broadcast %49 : vector<1x8x1xf32> to vector<1x8x8xf32>
    %51 = arith.subf %47, %50 : vector<1x8x8xf32>
    %52 = math.exp %51 : vector<1x8x8xf32>
    %cst_17 = arith.constant dense<0.000000e+00> : vector<1x8xf32>
    %53 = vector.multi_reduction <add>, %52, %cst_17 [2] : vector<1x8x8xf32> to vector<1x8xf32>
    %54 = vector.shape_cast %53 : vector<1x8xf32> to vector<1x8x1xf32>
    %55 = tpu.reciprocal %54 : vector<1x8x1xf32> -> vector<1x8x1xf32>
    %56 = vector.broadcast %55 : vector<1x8x1xf32> to vector<1x8x8xf32>
    %57 = arith.mulf %52, %56 : vector<1x8x8xf32>
    "tpu.trace_start"() <{level = 10 : i32, message = "bqk,bkd->bqd"}> : () -> ()
    %cst_18 = arith.constant dense<0.000000e+00> : vector<1x8x8xf32>
    %58 = tpu.matmul %57, %45, %cst_18 {dimension_numbers = #tpu.dot_dimension_numbers<[2], [1], [1], [2], [0, 0, 0, 1, 1, 2], [0], [0]>} : vector<1x8x8xf32>, vector<1x8x8xf32>, vector<1x8x8xf32> -> vector<1x8x8xf32>
    "tpu.trace_stop"() : () -> ()
    %59 = vector.shape_cast %58 : vector<1x8x8xf32> to vector<8x8xf32>
    %c0_19 = arith.constant 0 : index
    %c8 = arith.constant 8 : index
    %60 = vector.load %arg18[%c0_19, %c8] : memref<8x32xf32, #tpu.memory_space<vmem>>, vector<8x8xf32>
    tpu.vector_store %arg18[%c0_19, %c8], %59 {strides = array<i32>} : memref<8x32xf32, #tpu.memory_space<vmem>>, vector<8x8xf32>,
    %61 = vector.extract_strided_slice %16 {offsets = [0, 0, 16], sizes = [1, 8, 8], strides = [1, 1, 1]} : vector<1x8x32xf32> to vector<1x8x8xf32>
    %62 = vector.extract_strided_slice %21 {offsets = [0, 0, 16], sizes = [1, 8, 8], strides = [1, 1, 1]} : vector<1x8x32xf32> to vector<1x8x8xf32>
    %63 = vector.extract_strided_slice %22 {offsets = [0, 0, 16], sizes = [1, 8, 8], strides = [1, 1, 1]} : vector<1x8x32xf32> to vector<1x8x8xf32>
    "tpu.trace_start"() <{level = 10 : i32, message = "bqd,bkd->bqk"}> : () -> ()
    %cst_20 = arith.constant dense<0.000000e+00> : vector<1x8x8xf32>
    %64 = tpu.matmul %61, %62, %cst_20 {dimension_numbers = #tpu.dot_dimension_numbers<[2], [2], [1], [1], [0, 0, 0, 1, 1, 1], [0], [0]>} : vector<1x8x8xf32>, vector<1x8x8xf32>, vector<1x8x8xf32> -> vector<1x8x8xf32>
    "tpu.trace_stop"() : () -> ()
    %65 = arith.addf %64, %24 : vector<1x8x8xf32>
    %cst_21 = arith.constant dense<0xFF800000> : vector<1x8xf32>
    %66 = vector.multi_reduction <maximumf>, %65, %cst_21 [2] : vector<1x8x8xf32> to vector<1x8xf32>
    %67 = vector.shape_cast %66 : vector<1x8xf32> to vector<1x8x1xf32>
    %68 = vector.broadcast %67 : vector<1x8x1xf32> to vector<1x8x8xf32>
    %69 = arith.subf %65, %68 : vector<1x8x8xf32>
    %70 = math.exp %69 : vector<1x8x8xf32>
    %cst_22 = arith.constant dense<0.000000e+00> : vector<1x8xf32>
    %71 = vector.multi_reduction <add>, %70, %cst_22 [2] : vector<1x8x8xf32> to vector<1x8xf32>
    %72 = vector.shape_cast %71 : vector<1x8xf32> to vector<1x8x1xf32>
    %73 = tpu.reciprocal %72 : vector<1x8x1xf32> -> vector<1x8x1xf32>
    %74 = vector.broadcast %73 : vector<1x8x1xf32> to vector<1x8x8xf32>
    %75 = arith.mulf %70, %74 : vector<1x8x8xf32>
    "tpu.trace_start"() <{level = 10 : i32, message = "bqk,bkd->bqd"}> : () -> ()
    %cst_23 = arith.constant dense<0.000000e+00> : vector<1x8x8xf32>
    %76 = tpu.matmul %75, %63, %cst_23 {dimension_numbers = #tpu.dot_dimension_numbers<[2], [1], [1], [2], [0, 0, 0, 1, 1, 2], [0], [0]>} : vector<1x8x8xf32>, vector<1x8x8xf32>, vector<1x8x8xf32> -> vector<1x8x8xf32>
    "tpu.trace_stop"() : () -> ()
    %77 = vector.shape_cast %76 : vector<1x8x8xf32> to vector<8x8xf32>
    %c0_24 = arith.constant 0 : index
    %c16 = arith.constant 16 : index
    %78 = vector.load %arg18[%c0_24, %c16] : memref<8x32xf32, #tpu.memory_space<vmem>>, vector<8x8xf32>
    tpu.vector_store %arg18[%c0_24, %c16], %77 {strides = array<i32>} : memref<8x32xf32, #tpu.memory_space<vmem>>, vector<8x8xf32>,
    %79 = vector.extract_strided_slice %16 {offsets = [0, 0, 24], sizes = [1, 8, 8], strides = [1, 1, 1]} : vector<1x8x32xf32> to vector<1x8x8xf32>
    %80 = vector.extract_strided_slice %21 {offsets = [0, 0, 24], sizes = [1, 8, 8], strides = [1, 1, 1]} : vector<1x8x32xf32> to vector<1x8x8xf32>
    %81 = vector.extract_strided_slice %22 {offsets = [0, 0, 24], sizes = [1, 8, 8], strides = [1, 1, 1]} : vector<1x8x32xf32> to vector<1x8x8xf32>
    "tpu.trace_start"() <{level = 10 : i32, message = "bqd,bkd->bqk"}> : () -> ()
    %cst_25 = arith.constant dense<0.000000e+00> : vector<1x8x8xf32>
    %82 = tpu.matmul %79, %80, %cst_25 {dimension_numbers = #tpu.dot_dimension_numbers<[2], [2], [1], [1], [0, 0, 0, 1, 1, 1], [0], [0]>} : vector<1x8x8xf32>, vector<1x8x8xf32>, vector<1x8x8xf32> -> vector<1x8x8xf32>
    "tpu.trace_stop"() : () -> ()
    %83 = arith.addf %82, %24 : vector<1x8x8xf32>
    %cst_26 = arith.constant dense<0xFF800000> : vector<1x8xf32>
    %84 = vector.multi_reduction <maximumf>, %83, %cst_26 [2] : vector<1x8x8xf32> to vector<1x8xf32>
    %85 = vector.shape_cast %84 : vector<1x8xf32> to vector<1x8x1xf32>
    %86 = vector.broadcast %85 : vector<1x8x1xf32> to vector<1x8x8xf32>
    %87 = arith.subf %83, %86 : vector<1x8x8xf32>
    %88 = math.exp %87 : vector<1x8x8xf32>
    %cst_27 = arith.constant dense<0.000000e+00> : vector<1x8xf32>
    %89 = vector.multi_reduction <add>, %88, %cst_27 [2] : vector<1x8x8xf32> to vector<1x8xf32>
    %90 = vector.shape_cast %89 : vector<1x8xf32> to vector<1x8x1xf32>
    %91 = tpu.reciprocal %90 : vector<1x8x1xf32> -> vector<1x8x1xf32>
    %92 = vector.broadcast %91 : vector<1x8x1xf32> to vector<1x8x8xf32>
    %93 = arith.mulf %88, %92 : vector<1x8x8xf32>
    "tpu.trace_start"() <{level = 10 : i32, message = "bqk,bkd->bqd"}> : () -> ()
    %cst_28 = arith.constant dense<0.000000e+00> : vector<1x8x8xf32>
    %94 = tpu.matmul %93, %81, %cst_28 {dimension_numbers = #tpu.dot_dimension_numbers<[2], [1], [1], [2], [0, 0, 0, 1, 1, 2], [0], [0]>} : vector<1x8x8xf32>, vector<1x8x8xf32>, vector<1x8x8xf32> -> vector<1x8x8xf32>
    "tpu.trace_stop"() : () -> ()
    %95 = vector.shape_cast %94 : vector<1x8x8xf32> to vector<8x8xf32>
    %c0_29 = arith.constant 0 : index
    %c24 = arith.constant 24 : index
    %96 = vector.load %arg18[%c0_29, %c24] : memref<8x32xf32, #tpu.memory_space<vmem>>, vector<8x8xf32>
    tpu.vector_store %arg18[%c0_29, %c24], %95 {strides = array<i32>} : memref<8x32xf32, #tpu.memory_space<vmem>>, vector<8x8xf32>,
    %c0_30 = arith.constant 0 : index
    %c0_31 = arith.constant 0 : index
    %97 = vector.load %arg18[%c0_30, %c0_31] : memref<8x32xf32, #tpu.memory_space<vmem>>, vector<8x32xf32>
    %c0_32 = arith.constant 0 : index
    %c0_33 = arith.constant 0 : index
    %98 = vector.load %arg3[%c0_32, %c0_33] : memref<32x32xf32, #tpu.memory_space<vmem>>, vector<32x32xf32>
    %cst_34 = arith.constant dense<0.000000e+00> : vector<8x32xf32>
    %99 = tpu.matmul %97, %98, %cst_34 {dimension_numbers = #tpu.dot_dimension_numbers<[1], [0], [0], [1], [0, 0, 1, 1], [], []>} : vector<8x32xf32>, vector<32x32xf32>, vector<8x32xf32> -> vector<8x32xf32>
    %100 = arith.addf %0, %99 : vector<8x32xf32>
    %c0_35 = arith.constant 0 : index
    %c0_36 = arith.constant 0 : index
    %101 = vector.load %arg7[%c0_35, %c0_36] : memref<1x32xf32, #tpu.memory_space<vmem>>, vector<1x32xf32>
    %c0_37 = arith.constant 0 : index
    %c0_38 = arith.constant 0 : index
    %102 = vector.load %arg8[%c0_37, %c0_38] : memref<1x32xf32, #tpu.memory_space<vmem>>, vector<1x32xf32>
    %cst_39 = arith.constant dense<0.000000e+00> : vector<8xf32>
    %103 = vector.multi_reduction <add>, %100, %cst_39 [1] : vector<8x32xf32> to vector<8xf32>
    %104 = vector.shape_cast %103 : vector<8xf32> to vector<8x1xf32>
    %cst_40 = arith.constant 3.200000e+01 : f32
    %105 = vector.broadcast %cst_40 : f32 to vector<8x1xf32>
    %106 = arith.divf %104, %105 : vector<8x1xf32>
    %107 = vector.broadcast %106 : vector<8x1xf32> to vector<8x32xf32>
    %108 = arith.subf %100, %107 : vector<8x32xf32>
    %109 = arith.mulf %108, %108 : vector<8x32xf32>
    %cst_41 = arith.constant dense<0.000000e+00> : vector<8xf32>
    %110 = vector.multi_reduction <add>, %109, %cst_41 [1] : vector<8x32xf32> to vector<8xf32>
    %111 = vector.shape_cast %110 : vector<8xf32> to vector<8x1xf32>
    %cst_42 = arith.constant 3.200000e+01 : f32
    %112 = vector.broadcast %cst_42 : f32 to vector<8x1xf32>
    %113 = arith.divf %111, %112 : vector<8x1xf32>
    %114 = vector.broadcast %106 : vector<8x1xf32> to vector<8x32xf32>
    %115 = arith.subf %100, %114 : vector<8x32xf32>
    %cst_43 = arith.constant 9.99999974E-6 : f32
    %116 = vector.broadcast %cst_43 : f32 to vector<8x1xf32>
    %117 = arith.addf %113, %116 : vector<8x1xf32>
    %118 = math.rsqrt %117 : vector<8x1xf32>
    %119 = vector.broadcast %118 : vector<8x1xf32> to vector<8x32xf32>
    %120 = arith.mulf %115, %119 : vector<8x32xf32>
    %121 = vector.broadcast %101 : vector<1x32xf32> to vector<8x32xf32>
    %122 = arith.mulf %120, %121 : vector<8x32xf32>
    %123 = vector.broadcast %102 : vector<1x32xf32> to vector<8x32xf32>
    %124 = arith.addf %122, %123 : vector<8x32xf32>
    %c0_44 = arith.constant 0 : index
    %c0_45 = arith.constant 0 : index
    %125 = vector.load %arg9[%c0_44, %c0_45] : memref<32x64xf32, #tpu.memory_space<vmem>>, vector<32x64xf32>
    %cst_46 = arith.constant dense<0.000000e+00> : vector<8x64xf32>
    %126 = tpu.matmul %124, %125, %cst_46 {dimension_numbers = #tpu.dot_dimension_numbers<[1], [0], [0], [1], [0, 0, 1, 1], [], []>} : vector<8x32xf32>, vector<32x64xf32>, vector<8x64xf32> -> vector<8x64xf32>
    %c0_47 = arith.constant 0 : index
    %c0_48 = arith.constant 0 : index
    %127 = vector.load %arg10[%c0_47, %c0_48] : memref<1x64xf32, #tpu.memory_space<vmem>>, vector<1x64xf32>
    %128 = vector.broadcast %127 : vector<1x64xf32> to vector<8x64xf32>
    %129 = arith.addf %126, %128 : vector<8x64xf32>
    %cst_49 = arith.constant 0.000000e+00 : f32
    %130 = vector.broadcast %cst_49 : f32 to vector<8x64xf32>
    %131 = arith.maximumf %129, %130 : vector<8x64xf32>
    %c0_50 = arith.constant 0 : index
    %c0_51 = arith.constant 0 : index
    %132 = vector.load %arg11[%c0_50, %c0_51] : memref<64x96xf32, #tpu.memory_space<vmem>>, vector<64x96xf32>
    %cst_52 = arith.constant dense<0.000000e+00> : vector<8x96xf32>
    %133 = tpu.matmul %131, %132, %cst_52 {dimension_numbers = #tpu.dot_dimension_numbers<[1], [0], [0], [1], [0, 0, 1, 1], [], []>} : vector<8x64xf32>, vector<64x96xf32>, vector<8x96xf32> -> vector<8x96xf32>
    %c0_53 = arith.constant 0 : index
    %c0_54 = arith.constant 0 : index
    %134 = vector.load %arg12[%c0_53, %c0_54] : memref<1x96xf32, #tpu.memory_space<vmem>>, vector<1x96xf32>
    %135 = vector.broadcast %134 : vector<1x96xf32> to vector<8x96xf32>
    %136 = arith.addf %133, %135 : vector<8x96xf32>
    %137 = vector.extract_strided_slice %136 {offsets = [0, 0], sizes = [8, 32], strides = [1, 1]} : vector<8x96xf32> to vector<8x32xf32>
    %138 = arith.addf %137, %124 : vector<8x32xf32>
    %c0_55 = arith.constant 0 : index
    %c0_56 = arith.constant 0 : index
    %139 = vector.load %arg13[%c0_55, %c0_56] : memref<32x32xf32, #tpu.memory_space<vmem>>, vector<32x32xf32>
    %cst_57 = arith.constant dense<0.000000e+00> : vector<8x32xf32>
    %140 = tpu.matmul %138, %139, %cst_57 {dimension_numbers = #tpu.dot_dimension_numbers<[1], [0], [0], [1], [0, 0, 1, 1], [], []>} : vector<8x32xf32>, vector<32x32xf32>, vector<8x32xf32> -> vector<8x32xf32>
    %c0_58 = arith.constant 0 : index
    %c0_59 = arith.constant 0 : index
    %141 = vector.load %arg14[%c0_58, %c0_59] : memref<1x32xf32, #tpu.memory_space<vmem>>, vector<1x32xf32>
    %142 = vector.broadcast %141 : vector<1x32xf32> to vector<8x32xf32>
    %143 = arith.addf %140, %142 : vector<8x32xf32>
    %c0_60 = arith.constant 0 : index
    %c0_61 = arith.constant 0 : index
    %144 = vector.load %arg15[%c0_60, %c0_61] : memref<1x32xf32, #tpu.memory_space<vmem>>, vector<1x32xf32>
    %c0_62 = arith.constant 0 : index
    %c0_63 = arith.constant 0 : index
    %145 = vector.load %arg16[%c0_62, %c0_63] : memref<1x32xf32, #tpu.memory_space<vmem>>, vector<1x32xf32>
    %cst_64 = arith.constant dense<0.000000e+00> : vector<8xf32>
    %146 = vector.multi_reduction <add>, %143, %cst_64 [1] : vector<8x32xf32> to vector<8xf32>
    %147 = vector.shape_cast %146 : vector<8xf32> to vector<8x1xf32>
    %cst_65 = arith.constant 3.200000e+01 : f32
    %148 = vector.broadcast %cst_65 : f32 to vector<8x1xf32>
    %149 = arith.divf %147, %148 : vector<8x1xf32>
    %150 = vector.broadcast %149 : vector<8x1xf32> to vector<8x32xf32>
    %151 = arith.subf %143, %150 : vector<8x32xf32>
    %152 = arith.mulf %151, %151 : vector<8x32xf32>
    %cst_66 = arith.constant dense<0.000000e+00> : vector<8xf32>
    %153 = vector.multi_reduction <add>, %152, %cst_66 [1] : vector<8x32xf32> to vector<8xf32>
    %154 = vector.shape_cast %153 : vector<8xf32> to vector<8x1xf32>
    %cst_67 = arith.constant 3.200000e+01 : f32
    %155 = vector.broadcast %cst_67 : f32 to vector<8x1xf32>
    %156 = arith.divf %154, %155 : vector<8x1xf32>
    %157 = vector.broadcast %149 : vector<8x1xf32> to vector<8x32xf32>
    %158 = arith.subf %143, %157 : vector<8x32xf32>
    %cst_68 = arith.constant 9.99999974E-6 : f32
    %159 = vector.broadcast %cst_68 : f32 to vector<8x1xf32>
    %160 = arith.addf %156, %159 : vector<8x1xf32>
    %161 = math.rsqrt %160 : vector<8x1xf32>
    %162 = vector.broadcast %161 : vector<8x1xf32> to vector<8x32xf32>
    %163 = arith.mulf %158, %162 : vector<8x32xf32>
    %164 = vector.broadcast %144 : vector<1x32xf32> to vector<8x32xf32>
    %165 = arith.mulf %163, %164 : vector<8x32xf32>
    %166 = vector.broadcast %145 : vector<1x32xf32> to vector<8x32xf32>
    %167 = arith.addf %165, %166 : vector<8x32xf32>
    %c0_69 = arith.constant 0 : index
    %c0_70 = arith.constant 0 : index
    %168 = vector.load %arg17[%c0_69, %c0_70] : memref<8x96xf32, #tpu.memory_space<vmem>>, vector<8x32xf32>
    tpu.vector_store %arg17[%c0_69, %c0_70], %167 {strides = array<i32>} : memref<8x96xf32, #tpu.memory_space<vmem>>, vector<8x32xf32>,
    %169 = vector.extract_strided_slice %136 {offsets = [0, 32], sizes = [8, 32], strides = [1, 1]} : vector<8x96xf32> to vector<8x32xf32>
    %170 = arith.addf %169, %124 : vector<8x32xf32>
    %c0_71 = arith.constant 0 : index
    %c0_72 = arith.constant 0 : index
    %171 = vector.load %arg13[%c0_71, %c0_72] : memref<32x32xf32, #tpu.memory_space<vmem>>, vector<32x32xf32>
    %cst_73 = arith.constant dense<0.000000e+00> : vector<8x32xf32>
    %172 = tpu.matmul %170, %171, %cst_73 {dimension_numbers = #tpu.dot_dimension_numbers<[1], [0], [0], [1], [0, 0, 1, 1], [], []>} : vector<8x32xf32>, vector<32x32xf32>, vector<8x32xf32> -> vector<8x32xf32>
    %c0_74 = arith.constant 0 : index
    %c0_75 = arith.constant 0 : index
    %173 = vector.load %arg14[%c0_74, %c0_75] : memref<1x32xf32, #tpu.memory_space<vmem>>, vector<1x32xf32>
    %174 = vector.broadcast %173 : vector<1x32xf32> to vector<8x32xf32>
    %175 = arith.addf %172, %174 : vector<8x32xf32>
    %c0_76 = arith.constant 0 : index
    %c0_77 = arith.constant 0 : index
    %176 = vector.load %arg15[%c0_76, %c0_77] : memref<1x32xf32, #tpu.memory_space<vmem>>, vector<1x32xf32>
    %c0_78 = arith.constant 0 : index
    %c0_79 = arith.constant 0 : index
    %177 = vector.load %arg16[%c0_78, %c0_79] : memref<1x32xf32, #tpu.memory_space<vmem>>, vector<1x32xf32>
    %cst_80 = arith.constant dense<0.000000e+00> : vector<8xf32>
    %178 = vector.multi_reduction <add>, %175, %cst_80 [1] : vector<8x32xf32> to vector<8xf32>
    %179 = vector.shape_cast %178 : vector<8xf32> to vector<8x1xf32>
    %cst_81 = arith.constant 3.200000e+01 : f32
    %180 = vector.broadcast %cst_81 : f32 to vector<8x1xf32>
    %181 = arith.divf %179, %180 : vector<8x1xf32>
    %182 = vector.broadcast %181 : vector<8x1xf32> to vector<8x32xf32>
    %183 = arith.subf %175, %182 : vector<8x32xf32>
    %184 = arith.mulf %183, %183 : vector<8x32xf32>
    %cst_82 = arith.constant dense<0.000000e+00> : vector<8xf32>
    %185 = vector.multi_reduction <add>, %184, %cst_82 [1] : vector<8x32xf32> to vector<8xf32>
    %186 = vector.shape_cast %185 : vector<8xf32> to vector<8x1xf32>
    %cst_83 = arith.constant 3.200000e+01 : f32
    %187 = vector.broadcast %cst_83 : f32 to vector<8x1xf32>
    %188 = arith.divf %186, %187 : vector<8x1xf32>
    %189 = vector.broadcast %181 : vector<8x1xf32> to vector<8x32xf32>
    %190 = arith.subf %175, %189 : vector<8x32xf32>
    %cst_84 = arith.constant 9.99999974E-6 : f32
    %191 = vector.broadcast %cst_84 : f32 to vector<8x1xf32>
    %192 = arith.addf %188, %191 : vector<8x1xf32>
    %193 = math.rsqrt %192 : vector<8x1xf32>
    %194 = vector.broadcast %193 : vector<8x1xf32> to vector<8x32xf32>
    %195 = arith.mulf %190, %194 : vector<8x32xf32>
    %196 = vector.broadcast %176 : vector<1x32xf32> to vector<8x32xf32>
    %197 = arith.mulf %195, %196 : vector<8x32xf32>
    %198 = vector.broadcast %177 : vector<1x32xf32> to vector<8x32xf32>
    %199 = arith.addf %197, %198 : vector<8x32xf32>
    %c0_85 = arith.constant 0 : index
    %c32 = arith.constant 32 : index
    %200 = vector.load %arg17[%c0_85, %c32] : memref<8x96xf32, #tpu.memory_space<vmem>>, vector<8x32xf32>
    tpu.vector_store %arg17[%c0_85, %c32], %199 {strides = array<i32>} : memref<8x96xf32, #tpu.memory_space<vmem>>, vector<8x32xf32>,
    %201 = vector.extract_strided_slice %136 {offsets = [0, 64], sizes = [8, 32], strides = [1, 1]} : vector<8x96xf32> to vector<8x32xf32>
    %202 = arith.addf %201, %124 : vector<8x32xf32>
    %c0_86 = arith.constant 0 : index
    %c0_87 = arith.constant 0 : index
    %203 = vector.load %arg13[%c0_86, %c0_87] : memref<32x32xf32, #tpu.memory_space<vmem>>, vector<32x32xf32>
    %cst_88 = arith.constant dense<0.000000e+00> : vector<8x32xf32>
    %204 = tpu.matmul %202, %203, %cst_88 {dimension_numbers = #tpu.dot_dimension_numbers<[1], [0], [0], [1], [0, 0, 1, 1], [], []>} : vector<8x32xf32>, vector<32x32xf32>, vector<8x32xf32> -> vector<8x32xf32>
    %c0_89 = arith.constant 0 : index
    %c0_90 = arith.constant 0 : index
    %205 = vector.load %arg14[%c0_89, %c0_90] : memref<1x32xf32, #tpu.memory_space<vmem>>, vector<1x32xf32>
    %206 = vector.broadcast %205 : vector<1x32xf32> to vector<8x32xf32>
    %207 = arith.addf %204, %206 : vector<8x32xf32>
    %c0_91 = arith.constant 0 : index
    %c0_92 = arith.constant 0 : index
    %208 = vector.load %arg15[%c0_91, %c0_92] : memref<1x32xf32, #tpu.memory_space<vmem>>, vector<1x32xf32>
    %c0_93 = arith.constant 0 : index
    %c0_94 = arith.constant 0 : index
    %209 = vector.load %arg16[%c0_93, %c0_94] : memref<1x32xf32, #tpu.memory_space<vmem>>, vector<1x32xf32>
    %cst_95 = arith.constant dense<0.000000e+00> : vector<8xf32>
    %210 = vector.multi_reduction <add>, %207, %cst_95 [1] : vector<8x32xf32> to vector<8xf32>
    %211 = vector.shape_cast %210 : vector<8xf32> to vector<8x1xf32>
    %cst_96 = arith.constant 3.200000e+01 : f32
    %212 = vector.broadcast %cst_96 : f32 to vector<8x1xf32>
    %213 = arith.divf %211, %212 : vector<8x1xf32>
    %214 = vector.broadcast %213 : vector<8x1xf32> to vector<8x32xf32>
    %215 = arith.subf %207, %214 : vector<8x32xf32>
    %216 = arith.mulf %215, %215 : vector<8x32xf32>
    %cst_97 = arith.constant dense<0.000000e+00> : vector<8xf32>
    %217 = vector.multi_reduction <add>, %216, %cst_97 [1] : vector<8x32xf32> to vector<8xf32>
    %218 = vector.shape_cast %217 : vector<8xf32> to vector<8x1xf32>
    %cst_98 = arith.constant 3.200000e+01 : f32
    %219 = vector.broadcast %cst_98 : f32 to vector<8x1xf32>
    %220 = arith.divf %218, %219 : vector<8x1xf32>
    %221 = vector.broadcast %213 : vector<8x1xf32> to vector<8x32xf32>
    %222 = arith.subf %207, %221 : vector<8x32xf32>
    %cst_99 = arith.constant 9.99999974E-6 : f32
    %223 = vector.broadcast %cst_99 : f32 to vector<8x1xf32>
    %224 = arith.addf %220, %223 : vector<8x1xf32>
    %225 = math.rsqrt %224 : vector<8x1xf32>
    %226 = vector.broadcast %225 : vector<8x1xf32> to vector<8x32xf32>
    %227 = arith.mulf %222, %226 : vector<8x32xf32>
    %228 = vector.broadcast %208 : vector<1x32xf32> to vector<8x32xf32>
    %229 = arith.mulf %227, %228 : vector<8x32xf32>
    %230 = vector.broadcast %209 : vector<1x32xf32> to vector<8x32xf32>
    %231 = arith.addf %229, %230 : vector<8x32xf32>
    %c0_100 = arith.constant 0 : index
    %c64 = arith.constant 64 : index
    %232 = vector.load %arg17[%c0_100, %c64] : memref<8x96xf32, #tpu.memory_space<vmem>>, vector<8x32xf32>
    tpu.vector_store %arg17[%c0_100, %c64], %231 {strides = array<i32>} : memref<8x96xf32, #tpu.memory_space<vmem>>, vector<8x32xf32>,
    return
  }
  func.func @transform_0(%arg0: i32) -> (i32, i32) {
    %c0_i32 = arith.constant 0 : i32
    %c0_i32_0 = arith.constant 0 : i32
    return %arg0, %c0_i32 : i32, i32
  }
  func.func @transform_1(%arg0: i32) -> (i32, i32) {
    %c0_i32 = arith.constant 0 : i32
    %c0_i32_0 = arith.constant 0 : i32
    %c0_i32_1 = arith.constant 0 : i32
    return %c0_i32, %c0_i32_0 : i32, i32
  }
  func.func @transform_2(%arg0: i32) -> (i32, i32) {
    %c0_i32 = arith.constant 0 : i32
    %c0_i32_0 = arith.constant 0 : i32
    %c0_i32_1 = arith.constant 0 : i32
    return %c0_i32, %c0_i32_0 : i32, i32
  }
  func.func @transform_3(%arg0: i32) -> (i32, i32) {
    %c0_i32 = arith.constant 0 : i32
    %c0_i32_0 = arith.constant 0 : i32
    %c0_i32_1 = arith.constant 0 : i32
    return %c0_i32, %c0_i32_0 : i32, i32
  }
  func.func @transform_4(%arg0: i32) -> (i32, i32) {
    %c0_i32 = arith.constant 0 : i32
    %c0_i32_0 = arith.constant 0 : i32
    %c0_i32_1 = arith.constant 0 : i32
    return %c0_i32, %c0_i32_0 : i32, i32
  }
  func.func @transform_5(%arg0: i32) -> (i32, i32) {
    %c0_i32 = arith.constant 0 : i32
    %c0_i32_0 = arith.constant 0 : i32
    %c0_i32_1 = arith.constant 0 : i32
    return %c0_i32, %c0_i32_0 : i32, i32
  }
  func.func @transform_6(%arg0: i32) -> (i32, i32) {
    %c0_i32 = arith.constant 0 : i32
    %c0_i32_0 = arith.constant 0 : i32
    %c0_i32_1 = arith.constant 0 : i32
    return %c0_i32, %c0_i32_0 : i32, i32
  }
  func.func @transform_7(%arg0: i32) -> (i32, i32) {
    %c0_i32 = arith.constant 0 : i32
    %c0_i32_0 = arith.constant 0 : i32
    %c0_i32_1 = arith.constant 0 : i32
    return %c0_i32, %c0_i32_0 : i32, i32
  }
  func.func @transform_8(%arg0: i32) -> (i32, i32) {
    %c0_i32 = arith.constant 0 : i32
    %c0_i32_0 = arith.constant 0 : i32
    %c0_i32_1 = arith.constant 0 : i32
    return %c0_i32, %c0_i32_0 : i32, i32
  }
  func.func @transform_9(%arg0: i32) -> (i32, i32) {
    %c0_i32 = arith.constant 0 : i32
    %c0_i32_0 = arith.constant 0 : i32
    %c0_i32_1 = arith.constant 0 : i32
    return %c0_i32, %c0_i32_0 : i32, i32
  }
  func.func @transform_10(%arg0: i32) -> (i32, i32) {
    %c0_i32 = arith.constant 0 : i32
    %c0_i32_0 = arith.constant 0 : i32
    %c0_i32_1 = arith.constant 0 : i32
    return %c0_i32, %c0_i32_0 : i32, i32
  }
  func.func @transform_11(%arg0: i32) -> (i32, i32) {
    %c0_i32 = arith.constant 0 : i32
    %c0_i32_0 = arith.constant 0 : i32
    %c0_i32_1 = arith.constant 0 : i32
    return %c0_i32, %c0_i32_0 : i32, i32
  }
  func.func @transform_12(%arg0: i32) -> (i32, i32) {
    %c0_i32 = arith.constant 0 : i32
    %c0_i32_0 = arith.constant 0 : i32
    %c0_i32_1 = arith.constant 0 : i32
    return %c0_i32, %c0_i32_0 : i32, i32
  }
  func.func @transform_13(%arg0: i32) -> (i32, i32) {
    %c0_i32 = arith.constant 0 : i32
    %c0_i32_0 = arith.constant 0 : i32
    %c0_i32_1 = arith.constant 0 : i32
    return %c0_i32, %c0_i32_0 : i32, i32
  }
  func.func @transform_14(%arg0: i32) -> (i32, i32) {
    %c0_i32 = arith.constant 0 : i32
    %c0_i32_0 = arith.constant 0 : i32
    %c0_i32_1 = arith.constant 0 : i32
    return %c0_i32, %c0_i32_0 : i32, i32
  }
  func.func @transform_15(%arg0: i32) -> (i32, i32) {
    %c0_i32 = arith.constant 0 : i32
    %c0_i32_0 = arith.constant 0 : i32
    %c0_i32_1 = arith.constant 0 : i32
    return %c0_i32, %c0_i32_0 : i32, i32
  }
  func.func @transform_16(%arg0: i32) -> (i32, i32) {
    %c0_i32 = arith.constant 0 : i32
    %c0_i32_0 = arith.constant 0 : i32
    return %arg0, %c0_i32 : i32, i32
  }
}

</mosaic_0001>

<bundles_post_ra>
// kernel: predictor_forward.1
= control target key start
LH: loop header
LB: loop body
LE: loop exit
PB: predicated region body
PF: predicated region fallthrough
CT: control target
= control target key end

     0   :  { %s1533_s21 = smov 0   ;;  %s1766_s0 = inlined_call_operand.vmem [shape: f32[16,32], index: 0, kind: input, shape index: {}]   ;;  %s1767_s1 = inlined_call_operand.vmem [shape: f32[32,160], index: 1, kind: input, shape index: {}]   ;;  %s1768_s2 = inlined_call_operand.vmem [shape: f32[32,32], index: 2, kind: input, shape index: {}]   ;;  %s1769_s3 = inlined_call_operand.vmem [shape: f32[8,32], index: 3, kind: input, shape index: {}]   ;;  %s1770_s4 = inlined_call_operand.vmem [shape: f32[8,32], index: 4, kind: input, shape index: {}]   ;;  %s1771_s5 = inlined_call_operand.vmem [shape: f32[8,8], index: 5, kind: input, shape index: {}]   ;;  %s1772_s6 = inlined_call_operand.vmem [shape: f32[1,32], index: 6, kind: input, shape index: {}]   ;;  %s1773_s7 = inlined_call_operand.vmem [shape: f32[1,32], index: 7, kind: input, shape index: {}]   ;;  %s1774_s8 = inlined_call_operand.vmem [shape: f32[32,64], index: 8, kind: input, shape index: {}]   ;;  %s1775_s9 = inlined_call_operand.vmem [shape: f32[1,64], index: 9, kind: input, shape index: {}]   ;;  %s1776_s10 = inlined_call_operand.vmem [shape: f32[64,96], index: 10, kind: input, shape index: {}]   ;;  %s1777_s11 = inlined_call_operand.vmem [shape: f32[1,96], index: 11, kind: input, shape index: {}]   ;;  %s1778_s12 = inlined_call_operand.vmem [shape: f32[32,32], index: 12, kind: input, shape index: {}]   ;;  %s1779_s13 = inlined_call_operand.vmem [shape: f32[1,32], index: 13, kind: input, shape index: {}]   ;;  %s1780_s14 = inlined_call_operand.vmem [shape: f32[1,32], index: 14, kind: input, shape index: {}]   ;;  %s1781_s15 = inlined_call_operand.vmem [shape: f32[1,32], index: 15, kind: input, shape index: {}]   ;;  %s1782_s16 = inlined_call_operand.vmem [shape: f32[16,96], index: 16, kind: output, shape index: {}]  }
   0x1   :  { %1784 = sst [smem:[#allocation3_spill]] %s1766_s0 }
   0x2 LB: > { %s1332_s22 = sadd.s32 4294967295, %s1430_s21   ;;  %p1336_p0 = scmp.ge.s32.totalorder %s1430_s21, 1  ;;  %s1430_s21 = sphi %s1533_s21, %s26_s21  }
   0x3   : > { %p461_p1 = scmp.lt.s32.totalorder %s1430_s21, 3 }
   0x5   : > { %p462_p2 = pnand %p1336_p0, %p461_p1 }
   0x6   : > { %p509_p3 = scmp.lt.s32.totalorder (!%p462_p2), %s1332_s22, 1  ;;  %s1432_s26 = smov (!%p462_p2), 96  }
   0x7   : > { %465 = sbr.rel (%p462_p2) target bundleno = 2789 (0xae5), region = 84  ;;  %s1433_s17 = smov (!%p462_p2), 32  }
   0x8   : > { %s1785_s20 = sld [smem:[#allocation3_spill]] (!%p462_p2)  ;;  %s1434_s24 = smov (!%p462_p2), 64  }
   0x9   : > { %s1435_s25 = smov (!%p462_p2), 88   ;;  %s1436_s27 = smov (!%p462_p2), 120  }
   0xa   : > { %s1437_s28 = smov (!%p462_p2), 72   ;;  %s1438_s30 = smov (!%p462_p2), 104  }
   0xb   : > { %s1439_s0 = smov (!%p462_p2), 112  }
   0xc   : > { %v525_v0 = vld [vmem:[%s1767_s1 + $0x38] sm:$0xff]  ;;  %v523_v1 = vld [vmem:[%s1767_s1 + $0x28] sm:$0xff]  ;;  %v524_v3 = vld [vmem:[%s1767_s1 + $0x30] sm:$0xff]  ;;  %s1788_s22 = smov (!%p509_p3, %s1332_s22), 1  ;;  %vm526_vm0 = vcmask 261120   ;;  %vm598_vm1 = vcmask 64512  }
   0xd   : > { %562 = vmatpush.msra.mxu1 %v525_v0  ;;  %v521_v2 = vld [vmem:[%s1767_s1 + $0x18] sm:$0xff]  ;;  %v522_v4 = vld [vmem:[%s1767_s1 + $0x20] sm:$0xff]  ;;  %v519_v5 = vld [vmem:[%s1767_s1 + $0x8] sm:$0xff]  ;;  %542 = vmatpush.msra.mxu0 %v524_v3  ;;  %s1783_s29 = sshll.u32 %s1788_s22, 3 }
   0xe   : > { %v520_v6 = vld [vmem:[%s1767_s1 + $0x10] sm:$0xff]  ;;  %v571_v7 = vld [vmem:[%s1770_s4] sm:$0xff]  ;;  %s512_s23 = scalar_lea.vmem %s1785_s20, %s1783_s29  ;;  %s1440_s20 = smov 80  }
   0xf   : > { %563 = vmatpush.msra.mxu1 %v523_v1  ;;  %574 = vrot.lane.b32.xlu1 %v571_v7, %s1432_s26  ;;  %v570_v8 = vld [vmem:[%s1769_s3] sm:$0xff] }
  0x10   : > { %543 = vmatpush.msra.mxu0 %v522_v4  ;;  %v518_v9 = vld [vmem:[%s1767_s1] sm:$0xff]  ;;  %584 = vrot.lane.b32.xlu0 %v570_v8, %s1433_s17 }
  0x11   : > { %564 = vmatpush.msra.mxu1 %v521_v2  ;;  %v1581_v10 = vld [vmem:[%s512_s23] sm:$0xff]  ;;  %s1441_s23 = smov 40  }
  0x12   : > { %544 = vmatpush.msra.mxu0 %v520_v6  ;;  %v594_v26 = vld [vmem:[%s1771_s5] sm:$0xff] }
  0x13   : > { %565 = vmatpush.msra.mxu1 %v519_v5 }
  0x14   : > { %1340 = vmatmul.msk.f32.vlgmr.msra.gmra.mxu1 %vm526_vm0, %v1581_v10  ;;  %545 = vmatpush.msra.mxu0 %v518_v9 }
  0x15   : > { %1339 = vmatmul.msk.f32.vlgmr.msra.gmra.mxu0 %vm526_vm0, %v1581_v10 }
  0x81   : > { %v575_v11 = vpop.permute.xlu1 %574 }
  0x82   : > { %v585_v16 = vpop.permute.xlu0 %584 }
  0x91   : > { %v567_v12 = vpop.f32.mrf.mxu1 }
  0x92   : > { %v588_v13 = vmul.f32 %v571_v7, %v567_v12  ;;  %v1587_v14 = vpop.f32.mrf.mxu0 }
  0x93   : > { %v577_v15 = vmul.f32 %v575_v11, %v1587_v14  ;;  %v587_v17 = vmul.f32 %v585_v16, %v1587_v14  ;;  %v572_v20 = vmul.f32 %v570_v8, %v1587_v14 }
  0x94   : > { %590 = vrot.lane.b32.xlu0 %v588_v13, %s1433_s17 }
  0x95   : > { %579 = vrot.lane.b32.xlu2 %v577_v15, %s1433_s17 }
  0xef   : > { %v580_v21 = vpop.permute.xlu2 %579 }
  0xf0   : > { %v582_v22 = vadd.f32 %v580_v21, %v572_v20 }
 0x106   : > { %v591_v18 = vpop.permute.xlu0 %590 }
 0x107   : > { %v593_v19 = vadd.f32 %v591_v18, %v587_v17 }
 0x109   : > { %596 = vrot.lane.b32.xlu1 %v593_v19, %s1432_s26 }
 0x111   : > { %649 = vrot.lane.b32.xlu1 %v1587_v14, %s1434_s24 }
 0x119   : > { %678 = vrot.lane.b32.xlu1 %v593_v19, %s1435_s25  ;;  %s1442_s25 = smov 56  }
 0x121   : > { %676 = vrot.lane.b32.xlu1 %v582_v22, %s1436_s27  ;;  %s1443_s27 = smov 48  }
 0x129   : > { %846 = vrot.lane.b32.xlu1 %v593_v19, %s1437_s28  ;;  %s1444_s28 = smov 8  }
 0x131   : > { %844 = vrot.lane.b32.xlu1 %v582_v22, %s1438_s30  ;;  %s1445_s30 = smov 16  }
 0x139   : > { %760 = vrot.lane.b32.xlu1 %v582_v22, %s1439_s0  ;;  %s1446_s0 = smov 24  }
 0x17b   : > { %v597_v23 = vpop.permute.xlu1 %596 }
 0x17c   : > { %1341 = vmatpush.xpose.msk.msra.mxu2 %vm598_vm1, %v597_v23 }
 0x17f   : > { %1342 = vmatmul.msk.f32.vlgmr.msra.gmra.mxu2 %vm598_vm1, %v582_v22 }
 0x183   : > { %v650_v24 = vpop.permute.xlu1 %649 }
 0x184   : > { %670 = vmatpush.msra.mxu3 %v650_v24 }
 0x18b   : > { %v679_v25 = vpop.permute.xlu1 %678 }
 0x18c   : > { %1344 = vmatpush.xpose.msk.msrb.mxu3 %vm598_vm1, %v679_v25 }
 0x193   : > { %v677_v30 = vpop.permute.xlu1 %676 }
 0x19b   : > { %v847_v31 = vpop.permute.xlu1 %846 }
 0x1a3   : > { %v845_v33 = vpop.permute.xlu1 %844 }
 0x1ab   : > { %v761_v38 = vpop.permute.xlu1 %760 }
 0x202   : > { %v621_v27 = vpop.f32.mrf.mxu2 }
 0x203   : > { %v622_v28 = vadd.f32 %v621_v27, %v594_v26 }
 0x205   : > { %v624_v29 = vsel %vm598_vm1, %v622_v28, -inf }
 0x206   : > { %625 = vmax.xlane.f32.xlu2 %v624_v29 }
 0x21e   : > { %762 = vrot.lane.b32.xlu2 %v593_v19, %s1440_s20 }
 0x279   : > { %v626_v32 = vpop.xlane.xlu2 %625 }
 0x27a   : > { %v627_v34 = vsub.f32 %v622_v28, %v626_v32 }
 0x27c   : > { %v628_v35 = vmul.f32 1.442695, %v627_v34 }
 0x27e   : > { %1398 = vpow2.f32 %v628_v35 }
 0x281   : > { %v763_v36 = vpop.permute.xlu2 %762 }
 0x282   : > { %1347 = vmatpush.xpose.msk.msrb.mxu0 %vm598_vm1, %v763_v36 }
 0x284   : > { %v1399_v37 = vpop.eup %1398 }
 0x285   : > { %1348 = vmatmul.msk.f32.vlgmr.msrb.gmra.mxu0 %vm598_vm1, %v761_v38  ;;  %v630_v39 = vsel %vm598_vm1, %v1399_v37, 0.0 }
 0x286   : > { %631 = vadd.xlane.f32.xlu0 %v630_v39 }
 0x2f9   : > { %v632_v40 = vpop.xlane.xlu0 %631 }
 0x2fa   : > { %1400 = vrcp.f32 %v632_v40  ;;  %v644_v44 = vand.u32 2147483648, %v632_v40  ;;  %v642_v46 = vand.u32 2147483647, %v632_v40  ;;  %vm638_vm3 = vweird.f32 %v632_v40 }
 0x2fc   : > { %v645_v48 = vor.u32 1.1754944e-38, %v644_v44  ;;  %vm643_vm5 = vcmp.eq.f32.partialorder %v642_v46, 8.507059e+37 }
 0x300   : > { %v1401_v41 = vpop.eup %1400 }
 0x301   : > { %v634_v42 = vmul.f32 %v1401_v41, %v632_v40  ;;  %vm639_vm2 = vweird.f32 %v1401_v41 }
 0x302   : > { %vm640_vm4 = vmor %vm638_vm3, %vm639_vm2  ;;  %v785_v56 = vpop.f32.mrf.mxu0 }
 0x303   : > { %v635_v43 = vsub.f32 1.0, %v634_v42  ;;  %v786_v57 = vadd.f32 %v785_v56, %v594_v26 }
 0x305   : > { %v636_v45 = vmul.f32 %v1401_v41, %v635_v43  ;;  %v788_v61 = vsel %vm598_vm1, %v786_v57, -inf }
 0x307   : > { %v637_v47 = vadd.f32 %v1401_v41, %v636_v45 }
 0x309   : > { %v641_v49 = vsel %vm640_vm4, %v1401_v41, %v637_v47  ;;  %vm758_vm4 = vcmask 130112  }
 0x30a   : > { %v646_v50 = vsel %vm643_vm5, %v645_v48, %v641_v49  ;;  %vm926_vm5 = vcmask 261312  }
 0x30b   : > { %v647_v51 = vmul.f32 %v1399_v37, %v646_v50 }
 0x30d   : > { %1343 = vmatmul.msk.f32.vlgmr.msra.gmra.mxu3 %vm598_vm1, %v647_v51 }
 0x30e   : > { %1350 = vmatpush.xpose.msk.msra.mxu3 %vm598_vm1, %v847_v31 }
 0x315   : > { %1345 = vmatmul.msk.f32.vlgmr.msrb.gmra.mxu3 %vm598_vm1, %v677_v30 }
 0x31d   : > { %1351 = vmatmul.msk.f32.vlgmr.msra.gmra.mxu3 %vm598_vm1, %v845_v33 }
 0x390   : > { %v672_v52 = vpop.f32.mrf.mxu3 }
 0x391   : > { %675 = vst.msk [vmem:[#allocation2] sm:$0xff] %vm598_vm1, %v672_v52 }
 0x398   : > { %v701_v53 = vpop.f32.mrf.mxu3 }
 0x399   : > { %v702_v54 = vadd.f32 %v701_v53, %v594_v26 }
 0x39b   : > { %v704_v55 = vsel %vm598_vm1, %v702_v54, -inf }
 0x39c   : > { %705 = vmax.xlane.f32.xlu0 %v704_v55 }
 0x3a0   : > { %v869_v58 = vpop.f32.mrf.mxu3 }
 0x3a1   : > { %v870_v59 = vadd.f32 %v869_v58, %v594_v26  ;;  %v931_v58 = vld [vmem:[%s1768_s2 + $0x10] sm:$0xff] }
 0x3a3   : > { %v872_v60 = vsel %vm598_vm1, %v870_v59, -inf }
 0x3a4   : > { %873 = vmax.xlane.f32.xlu1 %v872_v60  ;;  %789 = vmax.xlane.f32.xlu0 %v788_v61  ;;  %v929_v60 = vld [vmem:[%s1768_s2] sm:$0xff] }
 0x3bd   : > { %896 = vrot.lane.b32.xlu1 %v1587_v14, %s1441_s23 }
 0x40f   : > { %v706_v62 = vpop.xlane.xlu0 %705 }
 0x410   : > { %v707_v63 = vsub.f32 %v702_v54, %v706_v62 }
 0x412   : > { %v708_v0 = vmul.f32 1.442695, %v707_v63 }
 0x414   : > { %1402 = vpow2.f32 %v708_v0 }
 0x417   : > { %v790_v1 = vpop.xlane.xlu0 %789  ;;  %v874_v8 = vpop.xlane.xlu1 %873 }
 0x418   : > { %v791_v2 = vsub.f32 %v786_v57, %v790_v1  ;;  %v875_v9 = vsub.f32 %v870_v59, %v874_v8  ;;  %v932_v57 = vld [vmem:[%s1768_s2 + $0x18] sm:$0xff]  ;;  %v930_v59 = vld [vmem:[%s1768_s2 + $0x8] sm:$0xff] }
 0x419   : > { %948 = vmatpush.msra.mxu0 %v932_v57 }
 0x41a   : > { %v1403_v3 = vpop.eup %1402  ;;  %v792_v4 = vmul.f32 1.442695, %v791_v2  ;;  %v876_v11 = vmul.f32 1.442695, %v875_v9 }
 0x41b   : > { %v710_v5 = vsel %vm598_vm1, %v1403_v3, 0.0  ;;  %949 = vmatpush.msra.mxu0 %v931_v58 }
 0x41c   : > { %711 = vadd.xlane.f32.xlu2 %v710_v5  ;;  %1404 = vpow2.f32 %v792_v4 }
 0x41d   : > { %1406 = vpow2.f32 %v876_v11  ;;  %950 = vmatpush.msra.mxu0 %v930_v59 }
 0x41f   : > { %951 = vmatpush.msra.mxu0 %v929_v60  ;;  %v1389_v60 = vld [vmem:[%s1779_s13] ss:$0 sm:$0xff] }
 0x422   : > { %v1617_v6 = vpop.eup %1404 }
 0x423   : > { %v794_v7 = vsel %vm598_vm1, %v1617_v6, 0.0  ;;  %v1407_v12 = vpop.eup %1406 }
 0x424   : > { %795 = vadd.xlane.f32.xlu0 %v794_v7  ;;  %v878_v13 = vsel %vm598_vm1, %v1407_v12, 0.0 }
 0x438   : > { %728 = vrot.lane.b32.xlu0 %v1587_v14, %s1442_s25 }
 0x462   : > { %879 = vadd.xlane.f32.xlu0 %v878_v13 }
 0x476   : > { %812 = vrot.lane.b32.xlu0 %v1587_v14, %s1443_s27  ;;  %v897_v14 = vpop.permute.xlu1 %896 }
 0x48f   : > { %v712_v15 = vpop.xlane.xlu2 %711 }
 0x490   : > { %1408 = vrcp.f32 %v712_v15  ;;  %v724_v21 = vand.u32 2147483648, %v712_v15  ;;  %vm718_vm7 = vweird.f32 %v712_v15  ;;  %v722_v22 = vand.u32 2147483647, %v712_v15 }
 0x492   : > { %v725_v25 = vor.u32 1.1754944e-38, %v724_v21  ;;  %vm723_vm9 = vcmp.eq.f32.partialorder %v722_v22, 8.507059e+37 }
 0x496   : > { %v1409_v16 = vpop.eup %1408 }
 0x497   : > { %v714_v17 = vmul.f32 %v1409_v16, %v712_v15  ;;  %vm719_vm6 = vweird.f32 %v1409_v16  ;;  %v796_v23 = vpop.xlane.xlu0 %795 }
 0x498   : > { %vm720_vm8 = vmor %vm718_vm7, %vm719_vm6  ;;  %1410 = vrcp.f32 %v796_v23  ;;  %v808_v37 = vand.u32 2147483648, %v796_v23  ;;  %vm802_vm11 = vweird.f32 %v796_v23  ;;  %v806_v39 = vand.u32 2147483647, %v796_v23 }
 0x499   : > { %v715_v18 = vsub.f32 1.0, %v714_v17  ;;  %v998_v17 = vld [vmem:[%s1774_s8 + $0x10] sm:$0xff] }
 0x49a   : > { %v809_v44 = vor.u32 1.1754944e-38, %v808_v37  ;;  %vm807_vm15 = vcmp.eq.f32.partialorder %v806_v39, 8.507059e+37  ;;  %v1032_v37 = vld [vmem:[%s1776_s10 + $0x20] sm:$0xff]  ;;  %v1030_v39 = vld [vmem:[%s1776_s10 + $0x10] sm:$0xff] }
 0x49b   : > { %v716_v19 = vmul.f32 %v1409_v16, %v715_v18  ;;  %v997_v18 = vld [vmem:[%s1774_s8 + $0x8] sm:$0xff] }
 0x49d   : > { %v717_v20 = vadd.f32 %v1409_v16, %v716_v19  ;;  %v996_v19 = vld [vmem:[%s1774_s8] sm:$0xff] }
 0x49e   : > { %v1411_v29 = vpop.eup %1410 }
 0x49f   : > { %v721_v24 = vsel %vm720_vm8, %v1409_v16, %v717_v20  ;;  %v798_v30 = vmul.f32 %v1411_v29, %v796_v23  ;;  %vm803_vm10 = vweird.f32 %v1411_v29  ;;  %v999_v16 = vld [vmem:[%s1774_s8 + $0x18] sm:$0xff] }
 0x4a0   : > { %v726_v26 = vsel %vm723_vm9, %v725_v25, %v721_v24  ;;  %vm804_vm12 = vmor %vm802_vm11, %vm803_vm10  ;;  %vm1040_vm10 = vcmask 523264  }
 0x4a1   : > { %v727_v28 = vmul.f32 %v1403_v3, %v726_v26  ;;  %v799_v32 = vsub.f32 1.0, %v798_v30  ;;  %v1447_v3 = vmov 32.0  }
 0x4a3   : > { %v800_v33 = vmul.f32 %v1411_v29, %v799_v32 }
 0x4a5   : > { %v801_v36 = vadd.f32 %v1411_v29, %v800_v33 }
 0x4a7   : > { %v805_v43 = vsel %vm804_vm12, %v1411_v29, %v801_v36  ;;  %v1033_v36 = vld [vmem:[%s1776_s10 + $0x28] sm:$0xff] }
 0x4a8   : > { %v810_v48 = vsel %vm807_vm15, %v809_v44, %v805_v43  ;;  %v1387_v43 = vld [vmem:[%s1775_s9] ss:$0 sm:$0xff] }
 0x4a9   : > { %v811_v52 = vmul.f32 %v1617_v6, %v810_v48  ;;  %v1066_v48 = vld [vmem:[%s1778_s12 + $0x8] sm:$0xff] }
 0x4aa   : > { %v729_v27 = vpop.permute.xlu0 %728 }
 0x4ab   : > { %749 = vmatpush.msrb.mxu2 %v729_v27 }
 0x4ac   : > { %1346 = vmatmul.msk.f32.vlgmr.msrb.gmra.mxu2 %vm598_vm1, %v727_v28 }
 0x4ad   : > { %917 = vmatpush.msra.mxu2 %v897_v14  ;;  %v1385_v14 = vld [vmem:[%s1772_s6] ss:$0 sm:$0xff] }
 0x4d5   : > { %v880_v31 = vpop.xlane.xlu0 %879 }
 0x4d6   : > { %1412 = vrcp.f32 %v880_v31  ;;  %v892_v40 = vand.u32 2147483648, %v880_v31  ;;  %v890_v42 = vand.u32 2147483647, %v880_v31  ;;  %vm886_vm14 = vweird.f32 %v880_v31 }
 0x4d7   : > { %1414 = vrcp.f32 %v1447_v3 }
 0x4d8   : > { %v893_v46 = vor.u32 1.1754944e-38, %v892_v40  ;;  %vm891_vm3 = vcmp.eq.f32.partialorder %v890_v42, 8.507059e+37  ;;  %v1029_v40 = vld [vmem:[%s1776_s10 + $0x8] sm:$0xff]  ;;  %v1068_v42 = vld [vmem:[%s1778_s12 + $0x18] sm:$0xff] }
 0x4d9   : > { %1088 = vmatpush.msrb.mxu2 %v1068_v42  ;;  %1158 = vmatpush.msrb.mxu0 %v1068_v42 }
 0x4dc   : > { %v1413_v34 = vpop.eup %1412 }
 0x4dd   : > { %v882_v35 = vmul.f32 %v1413_v34, %v880_v31  ;;  %vm887_vm13 = vweird.f32 %v1413_v34  ;;  %v1415_v4 = vpop.eup %1414  ;;  %v1386_v31 = vld [vmem:[%s1773_s7] ss:$0 sm:$0xff] }
 0x4de   : > { %vm888_vm2 = vmor %vm886_vm14, %vm887_vm13  ;;  %v963_v5 = vmul.f32 32.0, %v1415_v4  ;;  %vm967_vm6 = vweird.f32 %v1415_v4 }
 0x4df   : > { %v883_v38 = vsub.f32 1.0, %v882_v35  ;;  %v1034_v35 = vld [vmem:[%s1776_s10 + $0x30] sm:$0xff] }
 0x4e0   : > { %v964_v6 = vsub.f32 1.0, %v963_v5 }
 0x4e1   : > { %v884_v41 = vmul.f32 %v1413_v34, %v883_v38  ;;  %v1031_v38 = vld [vmem:[%s1776_s10 + $0x18] sm:$0xff] }
 0x4e2   : > { %v965_v7 = vmul.f32 %v1415_v4, %v964_v6 }
 0x4e3   : > { %v885_v45 = vadd.f32 %v1413_v34, %v884_v41  ;;  %v1028_v41 = vld [vmem:[%s1776_s10] sm:$0xff] }
 0x4e4   : > { %v966_v8 = vadd.f32 %v1415_v4, %v965_v7 }
 0x4e5   : > { %v889_v47 = vsel %vm888_vm2, %v1413_v34, %v885_v45  ;;  %v1035_v34 = vld [vmem:[%s1776_s10 + $0x38] sm:$0xff] }
 0x4e6   : > { %v894_v49 = vsel %vm891_vm3, %v893_v46, %v889_v47  ;;  %v1643_v9 = vsel %vm967_vm6, %v1415_v4, %v966_v8  ;;  %1052 = vmatpush.msrb.mxu3 %v1035_v34  ;;  %v1067_v47 = vld [vmem:[%s1778_s12 + $0x10] sm:$0xff]  ;;  %v1391_v4 = vld [vmem:[%s1779_s13] ss:$0 sm:$0xff]  ;;  %vm1277_vm6 = vcmask 785920  }
 0x4e7   : > { %v895_v50 = vmul.f32 %v1407_v12, %v894_v49  ;;  %1089 = vmatpush.msrb.mxu2 %v1067_v47  ;;  %1159 = vmatpush.msrb.mxu0 %v1067_v47  ;;  %v1065_v49 = vld [vmem:[%s1778_s12] sm:$0xff] }
 0x4e8   : > { %v813_v51 = vpop.permute.xlu0 %812  ;;  %1053 = vmatpush.msrb.mxu3 %v1034_v35 }
 0x4e9   : > { %833 = vmatpush.msrb.mxu1 %v813_v51  ;;  %1352 = vmatmul.msk.f32.vlgmr.msra.gmra.mxu2 %vm598_vm1, %v895_v50  ;;  %v1388_v50 = vld [vmem:[%s1777_s11] ss:$0 sm:$0xff] }
 0x4ea   : > { %1349 = vmatmul.msk.f32.vlgmr.msrb.gmra.mxu1 %vm598_vm1, %v811_v52  ;;  %vm842_vm1 = vcmask 195712   ;;  %1054 = vmatpush.msrb.mxu3 %v1033_v36 }
 0x4eb   : > { %1019 = vmatpush.msra.mxu1 %v999_v16  ;;  %1090 = vmatpush.msrb.mxu2 %v1066_v48 }
 0x4ec   : > { %1055 = vmatpush.msrb.mxu3 %v1032_v37  ;;  %1160 = vmatpush.msrb.mxu0 %v1066_v48 }
 0x4ed   : > { %1020 = vmatpush.msra.mxu1 %v998_v17  ;;  %1091 = vmatpush.msrb.mxu2 %v1065_v49 }
 0x4ee   : > { %1056 = vmatpush.msrb.mxu3 %v1031_v38  ;;  %1161 = vmatpush.msrb.mxu0 %v1065_v49 }
 0x4ef   : > { %1021 = vmatpush.msra.mxu1 %v997_v18 }
 0x4f0   : > { %1057 = vmatpush.msrb.mxu3 %v1030_v39 }
 0x4f1   : > { %1022 = vmatpush.msra.mxu1 %v996_v19 }
 0x4f2   : > { %1058 = vmatpush.msrb.mxu3 %v1029_v40 }
 0x4f3   : > { %1233 = vmatpush.msrb.mxu1 %v1068_v42 }
 0x4f4   : > { %1059 = vmatpush.msrb.mxu3 %v1028_v41 }
 0x4f5   : > { %1234 = vmatpush.msrb.mxu1 %v1067_v47  ;;  %v1394_v47 = vld [vmem:[%s1781_s15] ss:$0 sm:$0xff] }
 0x4f7   : > { %1235 = vmatpush.msrb.mxu1 %v1066_v48 }
 0x4f9   : > { %1236 = vmatpush.msrb.mxu1 %v1065_v49 }
 0x52f   : > { %v751_v53 = vpop.f32.mrf.mxu2 }
 0x530   : > { %755 = vrot.lane.b32.xlu2 %v751_v53, %s1444_s28  ;;  %s1786_s28 = sshll.u32 %s1788_s22, 3 }
 0x567   : > { %v835_v54 = vpop.f32.mrf.mxu1 }
 0x568   : > { %839 = vrot.lane.b32.xlu0 %v835_v54, %s1445_s30 }
 0x56c   : > { %v919_v55 = vpop.f32.mrf.mxu2 }
 0x570   : > { %923 = vrot.lane.b32.xlu0 %v919_v55, %s1446_s0  ;;  %s516_s0 = scalar_lea.vmem %s1782_s16, %s1786_s28 }
 0x58a   : > { %v756_v56 = vpop.permute.xlu2 %755 }
 0x58b   : > { %759 = vst.msk [vmem:[#allocation2] sm:$0xff] %vm758_vm4, %v756_v56 }
 0x5da   : > { %v840_v61 = vpop.permute.xlu0 %839 }
 0x5db   : > { %843 = vst.msk [vmem:[#allocation2] sm:$0xff] %vm842_vm1, %v840_v61 }
 0x5e2   : > { %v924_v62 = vpop.permute.xlu0 %923 }
 0x5e3   : > { %927 = vst.msk [vmem:[#allocation2] sm:$0xff] %vm926_vm5, %v924_v62  ;;  %vm1202_vm5 = vcmask 523520  }
 0x5ea   : > { %v928_v63 = vld [vmem:[#allocation2] sm:$0xff] }
 0x5eb   : > { %1353 = vmatmul.msk.f32.vlgmr.msra.gmra.mxu0 %vm526_vm0, %v928_v63 }
 0x668   : > { %v953_v0 = vpop.f32.mrf.mxu0 }
 0x669   : > { %v956_v1 = vadd.f32 %v953_v0, %v1581_v10  ;;  %v1390_v0 = vld [vmem:[%s1779_s13] ss:$0 sm:$0xff] }
 0x66b   : > { %v959_v2 = vsel %vm526_vm0, %v956_v1, 0.0 }
 0x66c   : > { %960 = vadd.xlane.f32.xlu1 %v959_v2 }
 0x6df   : > { %v961_v11 = vpop.xlane.xlu1 %960 }
 0x6e0   : > { %v969_v12 = vmul.f32 %v1643_v9, %v961_v11 }
 0x6e2   : > { %v970_v13 = vsub.f32 %v956_v1, %v969_v12 }
 0x6e4   : > { %v971_v15 = vmul.f32 %v970_v13, %v970_v13 }
 0x6e6   : > { %v972_v10 = vsel %vm526_vm0, %v971_v15, 0.0 }
 0x6e7   : > { %973 = vadd.xlane.f32.xlu0 %v972_v10 }
 0x75a   : > { %v974_v20 = vpop.xlane.xlu0 %973 }
 0x75b   : > { %v975_v21 = vmul.f32 %v974_v20, %v1643_v9 }
 0x75d   : > { %v976_v22 = vadd.f32 1e-05, %v975_v21 }
 0x75f   : > { %1416 = vrsqrt.f32 %v976_v22  ;;  %vm983_vm8 = vweird.f32 %v976_v22 }
 0x765   : > { %v1417_v23 = vpop.eup %1416 }
 0x766   : > { %v978_v24 = vmul.f32 %v1417_v23, %v976_v22  ;;  %vm984_vm7 = vweird.f32 %v1417_v23 }
 0x767   : > { %vm985_vm9 = vmor %vm983_vm8, %vm984_vm7 }
 0x768   : > { %v979_v25 = vmul.f32 %v1417_v23, %v978_v24 }
 0x76a   : > { %v980_v26 = vmul.f32 0.5, %v979_v25 }
 0x76c   : > { %v981_v27 = vsub.f32 1.5, %v980_v26 }
 0x76e   : > { %v982_v28 = vmul.f32 %v1417_v23, %v981_v27 }
 0x770   : > { %v986_v29 = vsel %vm985_vm9, %v1417_v23, %v982_v28 }
 0x771   : > { %v987_v30 = vmul.f32 %v986_v29, %v970_v13 }
 0x773   : > { %v991_v32 = vmul.f32 %v1385_v14, %v987_v30 }
 0x775   : > { %v995_v33 = vadd.f32 %v1386_v31, %v991_v32 }
 0x777   : > { %1129 = vrot.lane.b32.xlu2 %v995_v33, %s1433_s17  ;;  %1354 = vmatmul.msk.f32.vlgmr.msra.gmra.mxu1 %vm526_vm0, %v995_v33 }
 0x77f   : > { %1204 = vrot.lane.b32.xlu2 %v995_v33, %s1434_s24 }
 0x7d1   : > { %v1130_v51 = vpop.permute.xlu2 %1129 }
 0x7d9   : > { %v1205_v56 = vpop.permute.xlu2 %1204 }
 0x7f4   : > { %v1024_v44 = vpop.f32.mrf.mxu1 }
 0x7f5   : > { %v1025_v45 = vadd.f32 %v1387_v43, %v1024_v44 }
 0x7f7   : > { %v1027_v46 = vmax.f32 %v1025_v45, 0.0 }
 0x7f9   : > { %1355 = vmatmul.msk.f32.vlgmr.msrb.gmra.mxu3 %vm1040_vm10, %v1027_v46 }
 0x87c   : > { %v1061_v52 = vpop.f32.mrf.mxu3 }
 0x87d   : > { %v1062_v53 = vadd.f32 %v1388_v50, %v1061_v52 }
 0x87f   : > { %v1064_v54 = vadd.f32 %v1062_v53, %v995_v33  ;;  %v1132_v55 = vadd.f32 %v1130_v51, %v1062_v53  ;;  %v1207_v57 = vadd.f32 %v1205_v56, %v1062_v53 }
 0x881   : > { %1142 = vrot.lane.b32.xlu2 %v1132_v55, %s1432_s26  ;;  %1356 = vmatmul.msk.f32.vlgmr.msrb.gmra.mxu2 %vm526_vm0, %v1064_v54  ;;  %v1392_v55 = vld [vmem:[%s1780_s14] ss:$0 sm:$0xff] }
 0x889   : > { %1217 = vrot.lane.b32.xlu2 %v1207_v57, %s1434_s24 }
 0x8db   : > { %v1143_v58 = vpop.permute.xlu2 %1142 }
 0x8dc   : > { %1357 = vmatmul.msk.f32.vlgmr.msrb.gmra.mxu0 %vm526_vm0, %v1143_v58  ;;  %v1395_v58 = vld [vmem:[%s1780_s14] ss:$0 sm:$0xff] }
 0x8e3   : > { %v1218_v59 = vpop.permute.xlu2 %1217 }
 0x8e4   : > { %1358 = vmatmul.msk.f32.vlgmr.msrb.gmra.mxu1 %vm526_vm0, %v1218_v59 }
 0x904   : > { %v1093_v61 = vpop.f32.mrf.mxu2 }
 0x905   : > { %v1094_v62 = vadd.f32 %v1389_v60, %v1093_v61  ;;  %v1397_v61 = vld [vmem:[%s1781_s15] ss:$0 sm:$0xff] }
 0x907   : > { %v1098_v63 = vsel %vm526_vm0, %v1094_v62, 0.0 }
 0x908   : > { %1099 = vadd.xlane.f32.xlu0 %v1098_v63  ;;  %v1396_v63 = vld [vmem:[%s1781_s15] ss:$0 sm:$0xff] }
 0x959   : > { %v1163_v1 = vpop.f32.mrf.mxu0 }
 0x95a   : > { %v1164_v2 = vadd.f32 %v1390_v0, %v1163_v1 }
 0x95c   : > { %v1168_v3 = vsel %vm526_vm0, %v1164_v2, 0.0 }
 0x95d   : > { %1169 = vadd.xlane.f32.xlu2 %v1168_v3 }
 0x961   : > { %v1238_v5 = vpop.f32.mrf.mxu1 }
 0x962   : > { %v1239_v6 = vadd.f32 %v1391_v4, %v1238_v5 }
 0x964   : > { %v1243_v7 = vsel %vm526_vm0, %v1239_v6, 0.0 }
 0x965   : > { %1244 = vadd.xlane.f32.xlu1 %v1243_v7 }
 0x97b   : > { %v1100_v8 = vpop.xlane.xlu0 %1099 }
 0x97c   : > { %v1101_v13 = vmul.f32 %v1100_v8, %v1643_v9 }
 0x97e   : > { %v1102_v16 = vsub.f32 %v1094_v62, %v1101_v13 }
 0x980   : > { %v1103_v21 = vmul.f32 %v1102_v16, %v1102_v16 }
 0x982   : > { %v1104_v24 = vsel %vm526_vm0, %v1103_v21, 0.0 }
 0x9d0   : > { %v1170_v11 = vpop.xlane.xlu2 %1169 }
 0x9d1   : > { %v1171_v12 = vmul.f32 %v1170_v11, %v1643_v9 }
 0x9d3   : > { %v1172_v15 = vsub.f32 %v1164_v2, %v1171_v12 }
 0x9d5   : > { %v1173_v10 = vmul.f32 %v1172_v15, %v1172_v15 }
 0x9d7   : > { %v1174_v17 = vsel %vm526_vm0, %v1173_v10, 0.0 }
 0x9d8   : > { %v1245_v18 = vpop.xlane.xlu1 %1244  ;;  %1175 = vadd.xlane.f32.xlu1 %v1174_v17 }
 0x9d9   : > { %v1246_v19 = vmul.f32 %v1245_v18, %v1643_v9 }
 0x9db   : > { %v1247_v20 = vsub.f32 %v1239_v6, %v1246_v19 }
 0x9dd   : > { %v1248_v22 = vmul.f32 %v1247_v20, %v1247_v20 }
 0x9df   : > { %v1249_v23 = vsel %vm526_vm0, %v1248_v22, 0.0 }
 0x9e0   : > { %1250 = vadd.xlane.f32.xlu0 %v1249_v23  ;;  %1105 = vadd.xlane.f32.xlu1 %v1104_v24 }
 0xa4b   : > { %v1176_v25 = vpop.xlane.xlu1 %1175 }
 0xa4c   : > { %v1177_v26 = vmul.f32 %v1176_v25, %v1643_v9 }
 0xa4e   : > { %v1178_v27 = vadd.f32 1e-05, %v1177_v26 }
 0xa50   : > { %1418 = vrsqrt.f32 %v1178_v27  ;;  %vm1185_vm12 = vweird.f32 %v1178_v27 }
 0xa53   : > { %v1106_v28 = vpop.xlane.xlu1 %1105  ;;  %v1251_v14 = vpop.xlane.xlu0 %1250 }
 0xa54   : > { %v1107_v29 = vmul.f32 %v1106_v28, %v1643_v9  ;;  %v1252_v30 = vmul.f32 %v1251_v14, %v1643_v9  ;;  %v1393_v9 = vld [vmem:[%s1780_s14] ss:$0 sm:$0xff] }
 0xa56   : > { %v1419_v31 = vpop.eup %1418  ;;  %v1108_v32 = vadd.f32 1e-05, %v1107_v29  ;;  %v1253_v33 = vadd.f32 1e-05, %v1252_v30 }
 0xa57   : > { %v1180_v34 = vmul.f32 %v1419_v31, %v1178_v27  ;;  %vm1186_vm11 = vweird.f32 %v1419_v31 }
 0xa58   : > { %1420 = vrsqrt.f32 %v1108_v32  ;;  %vm1187_vm13 = vmor %vm1185_vm12, %vm1186_vm11  ;;  %vm1115_vm2 = vweird.f32 %v1108_v32  ;;  %vm1260_vm4 = vweird.f32 %v1253_v33 }
 0xa59   : > { %v1181_v35 = vmul.f32 %v1419_v31, %v1180_v34  ;;  %1422 = vrsqrt.f32 %v1253_v33 }
 0xa5b   : > { %v1182_v36 = vmul.f32 0.5, %v1181_v35 }
 0xa5d   : > { %v1183_v37 = vsub.f32 1.5, %v1182_v36 }
 0xa5e   : > { %v1421_v38 = vpop.eup %1420 }
 0xa5f   : > { %v1423_v39 = vpop.eup %1422  ;;  %v1184_v40 = vmul.f32 %v1419_v31, %v1183_v37  ;;  %v1110_v41 = vmul.f32 %v1421_v38, %v1108_v32  ;;  %vm1116_vm14 = vweird.f32 %v1421_v38 }
 0xa60   : > { %v1255_v42 = vmul.f32 %v1423_v39, %v1253_v33  ;;  %vm1261_vm15 = vweird.f32 %v1423_v39  ;;  %vm1117_vm3 = vmor %vm1115_vm2, %vm1116_vm14 }
 0xa61   : > { %v1188_v43 = vsel %vm1187_vm13, %v1419_v31, %v1184_v40  ;;  %v1111_v44 = vmul.f32 %v1421_v38, %v1110_v41  ;;  %vm1262_vm1 = vmor %vm1260_vm4, %vm1261_vm15 }
 0xa62   : > { %v1256_v45 = vmul.f32 %v1423_v39, %v1255_v42  ;;  %v1189_v46 = vmul.f32 %v1188_v43, %v1172_v15 }
 0xa63   : > { %v1112_v48 = vmul.f32 0.5, %v1111_v44 }
 0xa64   : > { %v1257_v49 = vmul.f32 0.5, %v1256_v45  ;;  %v1193_v50 = vmul.f32 %v1393_v9, %v1189_v46 }
 0xa65   : > { %v1113_v51 = vsub.f32 1.5, %v1112_v48 }
 0xa66   : > { %v1258_v52 = vsub.f32 1.5, %v1257_v49  ;;  %v1197_v53 = vadd.f32 %v1394_v47, %v1193_v50 }
 0xa67   : > { %v1114_v54 = vmul.f32 %v1421_v38, %v1113_v51 }
 0xa68   : > { %v1259_v56 = vmul.f32 %v1423_v39, %v1258_v52  ;;  %1199 = vrot.lane.b32.xlu0 %v1197_v53, %s1433_s17 }
 0xa69   : > { %v1118_v57 = vsel %vm1117_vm3, %v1421_v38, %v1114_v54 }
 0xa6a   : > { %v1119_v59 = vmul.f32 %v1118_v57, %v1102_v16  ;;  %v1263_v60 = vsel %vm1262_vm1, %v1423_v39, %v1259_v56 }
 0xa6b   : > { %v1264_v62 = vmul.f32 %v1263_v60, %v1247_v20 }
 0xa6c   : > { %v1123_v0 = vmul.f32 %v1392_v55, %v1119_v59 }
 0xa6d   : > { %v1268_v1 = vmul.f32 %v1395_v58, %v1264_v62 }
 0xa6e   : > { %v1127_v2 = vadd.f32 %v1397_v61, %v1123_v0 }
 0xa6f   : > { %v1272_v3 = vadd.f32 %v1396_v63, %v1268_v1 }
 0xa70   : > { %1128 = vst.msk [vmem:[%s516_s0] sm:$0xff] %vm526_vm0, %v1127_v2 }
 0xa71   : > { %1274 = vrot.lane.b32.xlu1 %v1272_v3, %s1434_s24 }
 0xada   : > { %v1200_v4 = vpop.permute.xlu0 %1199 }
 0xadb   : > { %1203 = vst.msk [vmem:[%s516_s0] sm:$0xff] %vm1202_vm5, %v1200_v4 }
 0xae3   : > { %v1275_v5 = vpop.permute.xlu1 %1274 }
 0xae4   : > { %1278 = vst.msk [vmem:[%s516_s0] sm:$0xff] %vm1277_vm6, %v1275_v5 }
 0xae5 PF: > { %s26_s21 = sadd.s32 1, %s1430_s21  }
 0xae6   : > { %p23_p4 = scmp.ge.s32.totalorder %s26_s21, 4  }
 0xae8   :  { %25 = sbr.rel (!%p23_p4) target bundleno = 2 (0x2), region = 114 }

</bundles_post_ra>
